<compile_context>
chip_gen: v7x
topology: tpu7x:2x2x1
jax: 0.10.0
libtpu: 0.0.40
codegen_flags: <defaults>
</compile_context>

<pallas_src>
import math
from functools import partial

import numpy as np
import jax
import jax.numpy as jnp
from jax import lax
from jax.experimental import pallas as pl
from jax.experimental.pallas import tpu as pltpu

# ----------------------------- model config --------------------------------
DIM = 32          # args.dim
N_LAYERS = 2      # args.n_layers
N_HEADS = 4       # args.n_heads
N_KV_HEADS = 4    # == n_heads -> n_rep == 1 (required for the reference fwd)
VOCAB = 64        # args.vocab_size
MULTIPLE_OF = 16  # args.multiple_of (small for the tiny config)
EPS = 1e-5        # args.norm_eps
MAX_SEQ = 16      # args.max_seq_len
HEAD_DIM = DIM // N_HEADS     # 8
HD2 = HEAD_DIM // 2           # 4
QW = N_HEADS * HEAD_DIM       # 32 (== DIM)

assert N_KV_HEADS == N_HEADS, "reference forward (xv = repeat_kv(xk)) needs n_rep == 1"

# hidden_dim=None path of FeedForward.__init__
_h = int(2 * (4 * DIM) / 3)
HIDDEN = MULTIPLE_OF * ((_h + MULTIPLE_OF - 1) // MULTIPLE_OF)  # 96

BATCH = 2
SEQ = 8
BL = BATCH * SEQ

VPAD = 128        # vocab padded to a full lane tile

# ---- packed weight blob layout (lanes), all segments start at row 0 --------
OFF_EMB = 0                               # (VPAD, DIM)   rows 0:VPAD
OFF_EMBT = OFF_EMB + DIM                  # (DIM, VPAD)   rows 0:DIM
LAYER_BASE = OFF_EMBT + VPAD              # per-layer segments start here
#   per layer:  wqk (DIM, 2*QW) | wo (QW, DIM) | w13 (DIM, 2*HIDDEN) | w2 (HIDDEN, DIM)
LAYER_STRIDE = 2 * QW + DIM + 2 * HIDDEN + DIM        # 320
WB_LANES = LAYER_BASE + N_LAYERS * LAYER_STRIDE        # 800

# ---- aux blob layout (lanes): cos | signed-sin | block-causal bias | norms --
AUX_NORM_OFF = 2 * HEAD_DIM + BL           # 32
AUX_LANES = AUX_NORM_OFF + DIM             # 64


# ----------------------------- Pallas kernel -------------------------------
def fused_forward_kernel(tok_ref, wb_ref, aux_ref, out_ref,
                         *, B, L, D, H, hd, hidden, n_layers, vpad, eps):
    """Whole TinyLlama2 forward, batch folded into one (B*L, D) slab."""
    f32 = jnp.float32
    bl = B * L
    hd2 = hd // 2
    qw = H * hd

    # ---- static views into the packed blobs ----
    emb = wb_ref[:, OFF_EMB:OFF_EMB + D]                      # (vpad, D)
    embT = wb_ref[0:D, OFF_EMBT:OFF_EMBT + vpad]              # (D, vpad)
    cos3 = aux_ref[:, 0:hd].reshape(1, bl, hd)                # [cos | cos]
    sin3 = aux_ref[:, hd:2 * hd].reshape(1, bl, hd)           # [-sin | sin]
    bias3 = aux_ref[:, 2 * hd:2 * hd + bl].reshape(1, bl, bl)  # block-causal 0/-1e30
    noff = 2 * hd + bl

    # ---- token embedding: one-hot rows from SMEM scalars, MXU gather ----
    lane_iota = lax.broadcasted_iota(jnp.int32, (1, vpad), 1)
    rows = [jnp.where(lane_iota == tok_ref[i], 1.0, 0.0) for i in range(bl)]
    onehot = jnp.concatenate(rows, axis=0).astype(f32)        # (bl, vpad)
    h = jnp.dot(onehot, emb, preferred_element_type=f32)      # (bl, D)

    def rmsnorm(x, w):
        ms = jnp.mean(x * x, axis=-1, keepdims=True)
        return x * lax.rsqrt(ms + eps) * w

    def rope(x3):
        # x3: (H, bl, hd) in per-head [real_half | imag_half] layout.
        # TODO(synk): could be pltpu.roll(x3, hd2, axis=-1); slice+concat is used
        # here for guaranteed lowering on an 8-wide lane axis.
        rot = jnp.concatenate([x3[..., hd2:], x3[..., :hd2]], axis=-1)
        return x3 * cos3 + rot * sin3

    for l in range(n_layers):                 # static unrolled (n_layers == 2)
        base = LAYER_BASE + l * LAYER_STRIDE
        wqk = wb_ref[0:D, base:base + 2 * qw]                                # (D, 2qw)
        wo = wb_ref[0:qw, base + 2 * qw:base + 2 * qw + D]                   # (qw, D)
        w13 = wb_ref[0:D, base + 2 * qw + D:base + 2 * qw + D + 2 * hidden]  # (D, 2hid)
        w2 = wb_ref[0:hidden, base + 2 * qw + D + 2 * hidden:base + LAYER_STRIDE]
        anw = aux_ref[2 * l:2 * l + 1, noff:noff + D]                        # (1, D)
        fnw = aux_ref[2 * l + 1:2 * l + 2, noff:noff + D]                    # (1, D)

        # -------- attention --------
        xn = rmsnorm(h, anw)                                          # (bl, D)
        # fused Q|K projection; Q columns pre-scaled by 1/sqrt(hd) on the host
        qk = jnp.dot(xn, wqk, preferred_element_type=f32)             # (bl, 2qw)
        q3 = jnp.stack([qk[:, hh * hd:(hh + 1) * hd] for hh in range(H)], axis=0)
        k3 = jnp.stack([qk[:, qw + hh * hd:qw + (hh + 1) * hd] for hh in range(H)],
                       axis=0)                                        # (H, bl, hd)
        q3 = rope(q3)
        k3 = rope(k3)

        s = jnp.einsum('hqd,hkd->hqk', q3, k3,
                       preferred_element_type=f32) + bias3            # (H, bl, bl)
        m = jnp.max(s, axis=-1, keepdims=True)
        p = jnp.exp(s - m)
        attn = p / jnp.sum(p, axis=-1, keepdims=True)                 # exact softmax

        # V == rotary-embedded K (module: xv = repeat_kv(xk), n_rep == 1)
        ctx3 = jnp.einsum('hqk,hkd->hqd', attn, k3,
                          preferred_element_type=f32)                 # (H, bl, hd)
        ctx = jnp.concatenate([ctx3[hh] for hh in range(H)], axis=-1)  # (bl, qw)
        h = h + jnp.dot(ctx, wo, preferred_element_type=f32)          # residual

        # -------- SwiGLU FFN (fused w1|w3) --------
        hn = rmsnorm(h, fnw)
        gu = jnp.dot(hn, w13, preferred_element_type=f32)             # (bl, 2hid)
        g = gu[:, :hidden]
        u = gu[:, hidden:]
        silu = g / (1.0 + jnp.exp(-g))                                # exact sigmoid
        h = h + jnp.dot(silu * u, w2, preferred_element_type=f32)

    # ---- final RMSNorm + tied output head (last token of each sequence) ----
    fin_w = aux_ref[2 * n_layers:2 * n_layers + 1, noff:noff + D]     # (1, D)
    h_last = jnp.concatenate([h[(b + 1) * L - 1:(b + 1) * L, :] for b in range(B)],
                             axis=0)                                  # (B, D)
    logits = jnp.dot(rmsnorm(h_last, fin_w), embT,
                     preferred_element_type=f32)                      # (B, vpad)
    out_ref[...] = logits


# ----------------------------- wrapper --------------------------------------
def tinyllama2_forward_pallas(tokens, prepared):
    """Full forward (targets=None path): returns logits of shape (B, 1, vocab)."""
    B, L = tokens.shape
    bl = B * L
    tok_flat = tokens.reshape(bl).astype(jnp.int32)

    kernel = partial(fused_forward_kernel, B=B, L=L, D=DIM, H=N_HEADS,
                     hd=HEAD_DIM, hidden=HIDDEN, n_layers=N_LAYERS,
                     vpad=VPAD, eps=EPS)

    # Single grid step (batch folded into the kernel).
    # TODO(synk): on v7x (2 TCs) a size-2 "parallel" batch grid could be
    # benchmarked against this folded version; folded is best on v5e/v6e.
    grid_spec = pltpu.PrefetchScalarGridSpec(
        num_scalar_prefetch=1,                      # tokens -> SMEM
        grid=(1,),
        in_specs=[
            pl.BlockSpec(prepared["wb"].shape, lambda i, tok: (0, 0)),   # weights blob
            pl.BlockSpec(prepared["aux"].shape, lambda i, tok: (0, 0)),  # rope/bias/norms
        ],
        out_specs=pl.BlockSpec((B, VPAD), lambda i, tok: (0, 0)),
    )
    logits_pad = pl.pallas_call(
        kernel,
        out_shape=jax.ShapeDtypeStruct((B, VPAD), jnp.float32),
        grid_spec=grid_spec,
        compiler_params=pltpu.CompilerParams(dimension_semantics=("arbitrary",)),
    )(tok_flat, prepared["wb"], prepared["aux"])
    return logits_pad[:, None, :VOCAB]


# --------------------- one-time weight preparation (hoisted) ----------------
def prepare_weights(params, cos, sin, B, L):
    """Host-side, done ONCE: pack every weight into two lane-dense blobs."""
    assert N_KV_HEADS == N_HEADS
    bl = B * L
    assert bl >= 2 * N_LAYERS + 1, "aux blob needs >= 2*n_layers+1 rows for norms"

    # per-head interleaved -> split-halves permutation (RoPE layout)
    perm = np.concatenate([np.arange(0, HEAD_DIM, 2), np.arange(1, HEAD_DIM, 2)])
    qscale = 1.0 / math.sqrt(HEAD_DIM)

    wb = np.zeros((VPAD, WB_LANES), np.float32)
    emb = np.asarray(params["emb"], np.float32)                   # (VOCAB, DIM)
    wb[:VOCAB, OFF_EMB:OFF_EMB + DIM] = emb
    wb[:DIM, OFF_EMBT:OFF_EMBT + VOCAB] = emb.T

    for l, lp in enumerate(params["layers"]):
        base = LAYER_BASE + l * LAYER_STRIDE
        wq = np.asarray(lp["wq"], np.float32).reshape(DIM, N_HEADS, HEAD_DIM)
        wk = np.asarray(lp["wk"], np.float32).reshape(DIM, N_HEADS, HEAD_DIM)
        wo = np.asarray(lp["wo"], np.float32).reshape(N_HEADS, HEAD_DIM, DIM)
        wq_p = wq[:, :, perm].reshape(DIM, QW) * qscale           # scale folded into Q
        wk_p = wk[:, :, perm].reshape(DIM, QW)
        wo_p = wo[:, perm, :].reshape(QW, DIM)
        wb[:DIM, base:base + QW] = wq_p
        wb[:DIM, base + QW:base + 2 * QW] = wk_p
        wb[:QW, base + 2 * QW:base + 2 * QW + DIM] = wo_p
        off = base + 2 * QW + DIM
        wb[:DIM, off:off + HIDDEN] = np.asarray(lp["w1"], np.float32)
        wb[:DIM, off + HIDDEN:off + 2 * HIDDEN] = np.asarray(lp["w3"], np.float32)
        wb[:HIDDEN, off + 2 * HIDDEN:base + LAYER_STRIDE] = np.asarray(lp["w2"],
                                                                       np.float32)

    aux = np.zeros((bl, AUX_LANES), np.float32)
    cos_np = np.asarray(cos, np.float32)                          # (L, hd2)
    sin_np = np.asarray(sin, np.float32)
    aux[:, 0:HEAD_DIM] = np.tile(np.concatenate([cos_np, cos_np], 1), (B, 1))
    aux[:, HEAD_DIM:2 * HEAD_DIM] = np.tile(np.concatenate([-sin_np, sin_np], 1), (B, 1))
    pos = np.arange(bl)
    allowed = ((pos[:, None] // L) == (pos[None, :] // L)) & (pos[None, :] <= pos[:, None])
    aux[:, 2 * HEAD_DIM:2 * HEAD_DIM + bl] = np.where(allowed, 0.0, -1e30)
    for l, lp in enumerate(params["layers"]):
        aux[2 * l, AUX_NORM_OFF:AUX_NORM_OFF + DIM] = np.asarray(lp["attn_norm"])
        aux[2 * l + 1, AUX_NORM_OFF:AUX_NORM_OFF + DIM] = np.asarray(lp["ffn_norm"])
    aux[2 * N_LAYERS, AUX_NORM_OFF:AUX_NORM_OFF + DIM] = np.asarray(params["norm_w"])

    # Weights kept f32 (bf16 packing would halve DMA bytes but is irrelevant
    # at this size and would loosen the tolerance).
    return dict(wb=jnp.asarray(wb), aux=jnp.asarray(aux))


def precompute_freqs_cis(dim, end, theta=10000.0):
    freqs = 1.0 / (theta ** (jnp.arange(0, dim, 2)[: dim // 2].astype(jnp.float32) / dim))
    t = jnp.arange(end, dtype=jnp.float32)
    f = jnp.outer(t, freqs)
    return jnp.cos(f), jnp.sin(f)


def init_params(key):
    std = 0.02
    std_small = 0.02 / math.sqrt(2 * N_LAYERS)
    keys = jax.random.split(key, 1 + 7 * N_LAYERS)
    emb = jax.random.normal(keys[0], (VOCAB, DIM), jnp.float32) * std  # tied
    layers = []
    ki = 1
    for _ in range(N_LAYERS):
        layers.append(dict(
            wq=jax.random.normal(keys[ki + 0], (DIM, N_HEADS * HEAD_DIM), jnp.float32) * std,
            wk=jax.random.normal(keys[ki + 1], (DIM, N_KV_HEADS * HEAD_DIM), jnp.float32) * std,
            wo=jax.random.normal(keys[ki + 2], (N_HEADS * HEAD_DIM, DIM), jnp.float32) * std_small,
            w1=jax.random.normal(keys[ki + 3], (DIM, HIDDEN), jnp.float32) * std,
            w2=jax.random.normal(keys[ki + 4], (HIDDEN, DIM), jnp.float32) * std,
            w3=jax.random.normal(keys[ki + 5], (DIM, HIDDEN), jnp.float32) * std_small,
            attn_norm=jnp.ones((DIM,), jnp.float32),
            ffn_norm=jnp.ones((DIM,), jnp.float32),
        ))
        ki += 7
    # wv exists in the torch module but never affects the forward output
    # (xv is overwritten by repeat_kv(xk)), so it is omitted.
    return dict(emb=emb, layers=layers, norm_w=jnp.ones((DIM,), jnp.float32))


# ----------------------------- pure-JAX reference ---------------------------
def ref_forward(tokens, params, cos, sin):
    B, L = tokens.shape
    H, hd = N_HEADS, HEAD_DIM
    emb = params["emb"]
    h = emb[tokens]

    def rms(x, w):
        return x * lax.rsqrt(jnp.mean(x * x, -1, keepdims=True) + EPS) * w

    mask = jnp.where(jnp.arange(L)[None, :] <= jnp.arange(L)[:, None], 0.0, -jnp.inf)

    def rope(x):  # interleaved pairs, exactly like the torch code
        xr, xi = x[..., 0::2], x[..., 1::2]
        c = cos[None, :, None, :]
        s = sin[None, :, None, :]
        outr = xr * c - xi * s
        outi = xr * s + xi * c
        return jnp.stack([outr, outi], axis=-1).reshape(x.shape)

    for lp in params["layers"]:
        xn = rms(h, lp["attn_norm"])
        xq = (xn @ lp["wq"]).reshape(B, L, H, hd)
        xk = (xn @ lp["wk"]).reshape(B, L, H, hd)
        xq, xk = rope(xq), rope(xk)
        xv = xk                                # module bug: xv = repeat_kv(xk, n_rep)
        q, k, v = (t.transpose(0, 2, 1, 3) for t in (xq, xk, xv))
        scores = jnp.einsum("bhqd,bhkd->bhqk", q, k) / math.sqrt(hd)
        scores = scores + mask[None, None]
        attn = jax.nn.softmax(scores, axis=-1)
        out = jnp.einsum("bhqk,bhkd->bhqd", attn, v)
        out = out.transpose(0, 2, 1, 3).reshape(B, L, DIM)
        h = h + out @ lp["wo"]
        hn = rms(h, lp["ffn_norm"])
        ff = (jax.nn.silu(hn @ lp["w1"]) * (hn @ lp["w3"])) @ lp["w2"]
        h = h + ff
    h = rms(h, params["norm_w"])
    return h[:, -1:, :] @ emb.T


# ----------------------------- main ------------------------------------------
if __name__ == "__main__":
    key = jax.random.PRNGKey(0)
    k_params, k_tok = jax.random.split(key)
    params = init_params(k_params)
    tokens = jax.random.randint(k_tok, (BATCH, SEQ), 0, VOCAB, dtype=jnp.int32)
    # explicit host-side range check (one-hot gather would silently zero OOB ids)
    assert int(jnp.min(tokens)) >= 0 and int(jnp.max(tokens)) < VOCAB

    freqs_cos, freqs_sin = precompute_freqs_cis(HEAD_DIM, MAX_SEQ)
    cos, sin = freqs_cos[:SEQ], freqs_sin[:SEQ]

    prepared = prepare_weights(params, cos, sin, BATCH, SEQ)   # hoisted: done once
    fwd = jax.jit(tinyllama2_forward_pallas)

    logits = jax.block_until_ready(fwd(tokens, prepared))

    ref = jax.block_until_ready(ref_forward(tokens, params, cos, sin))
    np.testing.assert_allclose(np.asarray(logits), np.asarray(ref),
                               rtol=2e-2, atol=3e-3)

    assert logits.shape == (BATCH, 1, VOCAB)
    print("KERNEL_OK")
</pallas_src>

<mosaic_0001>
module attributes {stable_mosaic.version = 11 : i64} {
  func.func @fused_forward_kernel(%arg0: i32, %arg1: memref<16xi32, #tpu.memory_space<smem>>, %arg2: memref<128x800xf32, #tpu.memory_space<vmem>>, %arg3: memref<16x64xf32, #tpu.memory_space<vmem>>, %arg4: memref<2x128xf32, #tpu.memory_space<vmem>>) attributes {dimension_semantics = [#tpu.dimension_semantics<arbitrary>], iteration_bounds = array<i64: 1>, scalar_prefetch = 1 : i64, scratch_operands = 0 : i64, tpu.core_type = #tpu.core_type<tc>, window_params = [{pipeline_mode = #tpu.pipeline_mode<synchronous>, transform_indices = @transform_0, window_bounds = array<i64: 128, 800>}, {pipeline_mode = #tpu.pipeline_mode<synchronous>, transform_indices = @transform_1, window_bounds = array<i64: 16, 64>}, {pipeline_mode = #tpu.pipeline_mode<synchronous>, transform_indices = @transform_2, window_bounds = array<i64: 2, 128>}]} {
    %c0 = arith.constant 0 : index
    %c0_0 = arith.constant 0 : index
    %0 = vector.load %arg2[%c0, %c0_0] : memref<128x800xf32, #tpu.memory_space<vmem>>, vector<128x32xf32>
    %c0_1 = arith.constant 0 : index
    %c32 = arith.constant 32 : index
    %1 = vector.load %arg2[%c0_1, %c32] : memref<128x800xf32, #tpu.memory_space<vmem>>, vector<32x128xf32>
    %c0_2 = arith.constant 0 : index
    %c0_3 = arith.constant 0 : index
    %2 = vector.load %arg3[%c0_2, %c0_3] : memref<16x64xf32, #tpu.memory_space<vmem>>, vector<16x8xf32>
    %3 = vector.shape_cast %2 : vector<16x8xf32> to vector<1x16x8xf32>
    %c0_4 = arith.constant 0 : index
    %c8 = arith.constant 8 : index
    %4 = vector.load %arg3[%c0_4, %c8] : memref<16x64xf32, #tpu.memory_space<vmem>>, vector<16x8xf32>
    %5 = vector.shape_cast %4 : vector<16x8xf32> to vector<1x16x8xf32>
    %c0_5 = arith.constant 0 : index
    %c16 = arith.constant 16 : index
    %6 = vector.load %arg3[%c0_5, %c16] : memref<16x64xf32, #tpu.memory_space<vmem>>, vector<16x16xf32>
    %7 = vector.shape_cast %6 : vector<16x16xf32> to vector<1x16x16xf32>
    %8 = tpu.iota {dimensions = array<i32: 1>} : vector<1x128xi32>
    %c0_6 = arith.constant 0 : index
    %9 = memref.load %arg1[%c0_6] : memref<16xi32, #tpu.memory_space<smem>>
    %10 = vector.broadcast %9 : i32 to vector<1x128xi32>
    %11 = arith.cmpi eq, %8, %10 : vector<1x128xi32>
    %cst = arith.constant 1.000000e+00 : f32
    %cst_7 = arith.constant 0.000000e+00 : f32
    %12 = vector.broadcast %cst : f32 to vector<1x128xf32>
    %13 = vector.broadcast %cst_7 : f32 to vector<1x128xf32>
    %14 = arith.select %11, %12, %13 : vector<1x128xi1>, vector<1x128xf32>
    %c1 = arith.constant 1 : index
    %15 = memref.load %arg1[%c1] : memref<16xi32, #tpu.memory_space<smem>>
    %16 = vector.broadcast %15 : i32 to vector<1x128xi32>
    %17 = arith.cmpi eq, %8, %16 : vector<1x128xi32>
    %cst_8 = arith.constant 1.000000e+00 : f32
    %cst_9 = arith.constant 0.000000e+00 : f32
    %18 = vector.broadcast %cst_8 : f32 to vector<1x128xf32>
    %19 = vector.broadcast %cst_9 : f32 to vector<1x128xf32>
    %20 = arith.select %17, %18, %19 : vector<1x128xi1>, vector<1x128xf32>
    %c2 = arith.constant 2 : index
    %21 = memref.load %arg1[%c2] : memref<16xi32, #tpu.memory_space<smem>>
    %22 = vector.broadcast %21 : i32 to vector<1x128xi32>
    %23 = arith.cmpi eq, %8, %22 : vector<1x128xi32>
    %cst_10 = arith.constant 1.000000e+00 : f32
    %cst_11 = arith.constant 0.000000e+00 : f32
    %24 = vector.broadcast %cst_10 : f32 to vector<1x128xf32>
    %25 = vector.broadcast %cst_11 : f32 to vector<1x128xf32>
    %26 = arith.select %23, %24, %25 : vector<1x128xi1>, vector<1x128xf32>
    %c3 = arith.constant 3 : index
    %27 = memref.load %arg1[%c3] : memref<16xi32, #tpu.memory_space<smem>>
    %28 = vector.broadcast %27 : i32 to vector<1x128xi32>
    %29 = arith.cmpi eq, %8, %28 : vector<1x128xi32>
    %cst_12 = arith.constant 1.000000e+00 : f32
    %cst_13 = arith.constant 0.000000e+00 : f32
    %30 = vector.broadcast %cst_12 : f32 to vector<1x128xf32>
    %31 = vector.broadcast %cst_13 : f32 to vector<1x128xf32>
    %32 = arith.select %29, %30, %31 : vector<1x128xi1>, vector<1x128xf32>
    %c4 = arith.constant 4 : index
    %33 = memref.load %arg1[%c4] : memref<16xi32, #tpu.memory_space<smem>>
    %34 = vector.broadcast %33 : i32 to vector<1x128xi32>
    %35 = arith.cmpi eq, %8, %34 : vector<1x128xi32>
    %cst_14 = arith.constant 1.000000e+00 : f32
    %cst_15 = arith.constant 0.000000e+00 : f32
    %36 = vector.broadcast %cst_14 : f32 to vector<1x128xf32>
    %37 = vector.broadcast %cst_15 : f32 to vector<1x128xf32>
    %38 = arith.select %35, %36, %37 : vector<1x128xi1>, vector<1x128xf32>
    %c5 = arith.constant 5 : index
    %39 = memref.load %arg1[%c5] : memref<16xi32, #tpu.memory_space<smem>>
    %40 = vector.broadcast %39 : i32 to vector<1x128xi32>
    %41 = arith.cmpi eq, %8, %40 : vector<1x128xi32>
    %cst_16 = arith.constant 1.000000e+00 : f32
    %cst_17 = arith.constant 0.000000e+00 : f32
    %42 = vector.broadcast %cst_16 : f32 to vector<1x128xf32>
    %43 = vector.broadcast %cst_17 : f32 to vector<1x128xf32>
    %44 = arith.select %41, %42, %43 : vector<1x128xi1>, vector<1x128xf32>
    %c6 = arith.constant 6 : index
    %45 = memref.load %arg1[%c6] : memref<16xi32, #tpu.memory_space<smem>>
    %46 = vector.broadcast %45 : i32 to vector<1x128xi32>
    %47 = arith.cmpi eq, %8, %46 : vector<1x128xi32>
    %cst_18 = arith.constant 1.000000e+00 : f32
    %cst_19 = arith.constant 0.000000e+00 : f32
    %48 = vector.broadcast %cst_18 : f32 to vector<1x128xf32>
    %49 = vector.broadcast %cst_19 : f32 to vector<1x128xf32>
    %50 = arith.select %47, %48, %49 : vector<1x128xi1>, vector<1x128xf32>
    %c7 = arith.constant 7 : index
    %51 = memref.load %arg1[%c7] : memref<16xi32, #tpu.memory_space<smem>>
    %52 = vector.broadcast %51 : i32 to vector<1x128xi32>
    %53 = arith.cmpi eq, %8, %52 : vector<1x128xi32>
    %cst_20 = arith.constant 1.000000e+00 : f32
    %cst_21 = arith.constant 0.000000e+00 : f32
    %54 = vector.broadcast %cst_20 : f32 to vector<1x128xf32>
    %55 = vector.broadcast %cst_21 : f32 to vector<1x128xf32>
    %56 = arith.select %53, %54, %55 : vector<1x128xi1>, vector<1x128xf32>
    %c8_22 = arith.constant 8 : index
    %57 = memref.load %arg1[%c8_22] : memref<16xi32, #tpu.memory_space<smem>>
    %58 = vector.broadcast %57 : i32 to vector<1x128xi32>
    %59 = arith.cmpi eq, %8, %58 : vector<1x128xi32>
    %cst_23 = arith.constant 1.000000e+00 : f32
    %cst_24 = arith.constant 0.000000e+00 : f32
    %60 = vector.broadcast %cst_23 : f32 to vector<1x128xf32>
    %61 = vector.broadcast %cst_24 : f32 to vector<1x128xf32>
    %62 = arith.select %59, %60, %61 : vector<1x128xi1>, vector<1x128xf32>
    %c9 = arith.constant 9 : index
    %63 = memref.load %arg1[%c9] : memref<16xi32, #tpu.memory_space<smem>>
    %64 = vector.broadcast %63 : i32 to vector<1x128xi32>
    %65 = arith.cmpi eq, %8, %64 : vector<1x128xi32>
    %cst_25 = arith.constant 1.000000e+00 : f32
    %cst_26 = arith.constant 0.000000e+00 : f32
    %66 = vector.broadcast %cst_25 : f32 to vector<1x128xf32>
    %67 = vector.broadcast %cst_26 : f32 to vector<1x128xf32>
    %68 = arith.select %65, %66, %67 : vector<1x128xi1>, vector<1x128xf32>
    %c10 = arith.constant 10 : index
    %69 = memref.load %arg1[%c10] : memref<16xi32, #tpu.memory_space<smem>>
    %70 = vector.broadcast %69 : i32 to vector<1x128xi32>
    %71 = arith.cmpi eq, %8, %70 : vector<1x128xi32>
    %cst_27 = arith.constant 1.000000e+00 : f32
    %cst_28 = arith.constant 0.000000e+00 : f32
    %72 = vector.broadcast %cst_27 : f32 to vector<1x128xf32>
    %73 = vector.broadcast %cst_28 : f32 to vector<1x128xf32>
    %74 = arith.select %71, %72, %73 : vector<1x128xi1>, vector<1x128xf32>
    %c11 = arith.constant 11 : index
    %75 = memref.load %arg1[%c11] : memref<16xi32, #tpu.memory_space<smem>>
    %76 = vector.broadcast %75 : i32 to vector<1x128xi32>
    %77 = arith.cmpi eq, %8, %76 : vector<1x128xi32>
    %cst_29 = arith.constant 1.000000e+00 : f32
    %cst_30 = arith.constant 0.000000e+00 : f32
    %78 = vector.broadcast %cst_29 : f32 to vector<1x128xf32>
    %79 = vector.broadcast %cst_30 : f32 to vector<1x128xf32>
    %80 = arith.select %77, %78, %79 : vector<1x128xi1>, vector<1x128xf32>
    %c12 = arith.constant 12 : index
    %81 = memref.load %arg1[%c12] : memref<16xi32, #tpu.memory_space<smem>>
    %82 = vector.broadcast %81 : i32 to vector<1x128xi32>
    %83 = arith.cmpi eq, %8, %82 : vector<1x128xi32>
    %cst_31 = arith.constant 1.000000e+00 : f32
    %cst_32 = arith.constant 0.000000e+00 : f32
    %84 = vector.broadcast %cst_31 : f32 to vector<1x128xf32>
    %85 = vector.broadcast %cst_32 : f32 to vector<1x128xf32>
    %86 = arith.select %83, %84, %85 : vector<1x128xi1>, vector<1x128xf32>
    %c13 = arith.constant 13 : index
    %87 = memref.load %arg1[%c13] : memref<16xi32, #tpu.memory_space<smem>>
    %88 = vector.broadcast %87 : i32 to vector<1x128xi32>
    %89 = arith.cmpi eq, %8, %88 : vector<1x128xi32>
    %cst_33 = arith.constant 1.000000e+00 : f32
    %cst_34 = arith.constant 0.000000e+00 : f32
    %90 = vector.broadcast %cst_33 : f32 to vector<1x128xf32>
    %91 = vector.broadcast %cst_34 : f32 to vector<1x128xf32>
    %92 = arith.select %89, %90, %91 : vector<1x128xi1>, vector<1x128xf32>
    %c14 = arith.constant 14 : index
    %93 = memref.load %arg1[%c14] : memref<16xi32, #tpu.memory_space<smem>>
    %94 = vector.broadcast %93 : i32 to vector<1x128xi32>
    %95 = arith.cmpi eq, %8, %94 : vector<1x128xi32>
    %cst_35 = arith.constant 1.000000e+00 : f32
    %cst_36 = arith.constant 0.000000e+00 : f32
    %96 = vector.broadcast %cst_35 : f32 to vector<1x128xf32>
    %97 = vector.broadcast %cst_36 : f32 to vector<1x128xf32>
    %98 = arith.select %95, %96, %97 : vector<1x128xi1>, vector<1x128xf32>
    %c15 = arith.constant 15 : index
    %99 = memref.load %arg1[%c15] : memref<16xi32, #tpu.memory_space<smem>>
    %100 = vector.broadcast %99 : i32 to vector<1x128xi32>
    %101 = arith.cmpi eq, %8, %100 : vector<1x128xi32>
    %cst_37 = arith.constant 1.000000e+00 : f32
    %cst_38 = arith.constant 0.000000e+00 : f32
    %102 = vector.broadcast %cst_37 : f32 to vector<1x128xf32>
    %103 = vector.broadcast %cst_38 : f32 to vector<1x128xf32>
    %104 = arith.select %101, %102, %103 : vector<1x128xi1>, vector<1x128xf32>
    %105 = tpu.concatenate %14, %20, %26, %32, %38, %44, %50, %56, %62, %68, %74, %80, %86, %92, %98, %104 in 0 : vector<1x128xf32>, vector<1x128xf32>, vector<1x128xf32>, vector<1x128xf32>, vector<1x128xf32>, vector<1x128xf32>, vector<1x128xf32>, vector<1x128xf32>, vector<1x128xf32>, vector<1x128xf32>, vector<1x128xf32>, vector<1x128xf32>, vector<1x128xf32>, vector<1x128xf32>, vector<1x128xf32>, vector<1x128xf32> -> vector<16x128xf32>
    %cst_39 = arith.constant dense<0.000000e+00> : vector<16x32xf32>
    %106 = tpu.matmul %105, %0, %cst_39 {dimension_numbers = #tpu.dot_dimension_numbers<[1], [0], [0], [1], [0, 0, 1, 1], [], []>} : vector<16x128xf32>, vector<128x32xf32>, vector<16x32xf32> -> vector<16x32xf32>
    %c0_40 = arith.constant 0 : index
    %c160 = arith.constant 160 : index
    %107 = vector.load %arg2[%c0_40, %c160] : memref<128x800xf32, #tpu.memory_space<vmem>>, vector<32x64xf32>
    %c0_41 = arith.constant 0 : index
    %c224 = arith.constant 224 : index
    %108 = vector.load %arg2[%c0_41, %c224] : memref<128x800xf32, #tpu.memory_space<vmem>>, vector<32x32xf32>
    %c0_42 = arith.constant 0 : index
    %c256 = arith.constant 256 : index
    %109 = vector.load %arg2[%c0_42, %c256] : memref<128x800xf32, #tpu.memory_space<vmem>>, vector<32x192xf32>
    %c0_43 = arith.constant 0 : index
    %c448 = arith.constant 448 : index
    %110 = vector.load %arg2[%c0_43, %c448] : memref<128x800xf32, #tpu.memory_space<vmem>>, vector<96x32xf32>
    %c0_44 = arith.constant 0 : index
    %c32_45 = arith.constant 32 : index
    %111 = vector.load %arg3[%c0_44, %c32_45] : memref<16x64xf32, #tpu.memory_space<vmem>>, vector<1x32xf32>
    %c1_46 = arith.constant 1 : index
    %c32_47 = arith.constant 32 : index
    %112 = vector.load %arg3[%c1_46, %c32_47] : memref<16x64xf32, #tpu.memory_space<vmem>>, vector<1x32xf32>
    %113 = arith.mulf %106, %106 : vector<16x32xf32>
    %cst_48 = arith.constant dense<0.000000e+00> : vector<16xf32>
    %114 = vector.multi_reduction <add>, %113, %cst_48 [1] : vector<16x32xf32> to vector<16xf32>
    %115 = vector.shape_cast %114 : vector<16xf32> to vector<16x1xf32>
    %cst_49 = arith.constant 3.200000e+01 : f32
    %116 = vector.broadcast %cst_49 : f32 to vector<16x1xf32>
    %117 = arith.divf %115, %116 : vector<16x1xf32>
    %cst_50 = arith.constant 9.99999974E-6 : f32
    %118 = vector.broadcast %cst_50 : f32 to vector<16x1xf32>
    %119 = arith.addf %117, %118 : vector<16x1xf32>
    %120 = math.rsqrt %119 : vector<16x1xf32>
    %121 = vector.broadcast %120 : vector<16x1xf32> to vector<16x32xf32>
    %122 = arith.mulf %106, %121 : vector<16x32xf32>
    %123 = vector.broadcast %111 : vector<1x32xf32> to vector<16x32xf32>
    %124 = arith.mulf %122, %123 : vector<16x32xf32>
    %cst_51 = arith.constant dense<0.000000e+00> : vector<16x64xf32>
    %125 = tpu.matmul %124, %107, %cst_51 {dimension_numbers = #tpu.dot_dimension_numbers<[1], [0], [0], [1], [0, 0, 1, 1], [], []>} : vector<16x32xf32>, vector<32x64xf32>, vector<16x64xf32> -> vector<16x64xf32>
    %126 = vector.extract_strided_slice %125 {offsets = [0, 0], sizes = [16, 8], strides = [1, 1]} : vector<16x64xf32> to vector<16x8xf32>
    %127 = vector.extract_strided_slice %125 {offsets = [0, 8], sizes = [16, 8], strides = [1, 1]} : vector<16x64xf32> to vector<16x8xf32>
    %128 = vector.extract_strided_slice %125 {offsets = [0, 16], sizes = [16, 8], strides = [1, 1]} : vector<16x64xf32> to vector<16x8xf32>
    %129 = vector.extract_strided_slice %125 {offsets = [0, 24], sizes = [16, 8], strides = [1, 1]} : vector<16x64xf32> to vector<16x8xf32>
    %130 = vector.shape_cast %126 : vector<16x8xf32> to vector<1x16x8xf32>
    %131 = vector.shape_cast %127 : vector<16x8xf32> to vector<1x16x8xf32>
    %132 = vector.shape_cast %128 : vector<16x8xf32> to vector<1x16x8xf32>
    %133 = vector.shape_cast %129 : vector<16x8xf32> to vector<1x16x8xf32>
    %134 = tpu.concatenate %130, %131, %132, %133 in 0 : vector<1x16x8xf32>, vector<1x16x8xf32>, vector<1x16x8xf32>, vector<1x16x8xf32> -> vector<4x16x8xf32>
    %135 = vector.extract_strided_slice %125 {offsets = [0, 32], sizes = [16, 8], strides = [1, 1]} : vector<16x64xf32> to vector<16x8xf32>
    %136 = vector.extract_strided_slice %125 {offsets = [0, 40], sizes = [16, 8], strides = [1, 1]} : vector<16x64xf32> to vector<16x8xf32>
    %137 = vector.extract_strided_slice %125 {offsets = [0, 48], sizes = [16, 8], strides = [1, 1]} : vector<16x64xf32> to vector<16x8xf32>
    %138 = vector.extract_strided_slice %125 {offsets = [0, 56], sizes = [16, 8], strides = [1, 1]} : vector<16x64xf32> to vector<16x8xf32>
    %139 = vector.shape_cast %135 : vector<16x8xf32> to vector<1x16x8xf32>
    %140 = vector.shape_cast %136 : vector<16x8xf32> to vector<1x16x8xf32>
    %141 = vector.shape_cast %137 : vector<16x8xf32> to vector<1x16x8xf32>
    %142 = vector.shape_cast %138 : vector<16x8xf32> to vector<1x16x8xf32>
    %143 = tpu.concatenate %139, %140, %141, %142 in 0 : vector<1x16x8xf32>, vector<1x16x8xf32>, vector<1x16x8xf32>, vector<1x16x8xf32> -> vector<4x16x8xf32>
    %144 = vector.extract_strided_slice %134 {offsets = [0, 0, 4], sizes = [4, 16, 4], strides = [1, 1, 1]} : vector<4x16x8xf32> to vector<4x16x4xf32>
    %145 = vector.extract_strided_slice %134 {offsets = [0, 0, 0], sizes = [4, 16, 4], strides = [1, 1, 1]} : vector<4x16x8xf32> to vector<4x16x4xf32>
    %146 = tpu.concatenate %144, %145 in 2 : vector<4x16x4xf32>, vector<4x16x4xf32> -> vector<4x16x8xf32>
    %147 = vector.broadcast %3 : vector<1x16x8xf32> to vector<4x16x8xf32>
    %148 = arith.mulf %134, %147 : vector<4x16x8xf32>
    %149 = vector.broadcast %5 : vector<1x16x8xf32> to vector<4x16x8xf32>
    %150 = arith.mulf %146, %149 : vector<4x16x8xf32>
    %151 = arith.addf %148, %150 : vector<4x16x8xf32>
    %152 = vector.extract_strided_slice %143 {offsets = [0, 0, 4], sizes = [4, 16, 4], strides = [1, 1, 1]} : vector<4x16x8xf32> to vector<4x16x4xf32>
    %153 = vector.extract_strided_slice %143 {offsets = [0, 0, 0], sizes = [4, 16, 4], strides = [1, 1, 1]} : vector<4x16x8xf32> to vector<4x16x4xf32>
    %154 = tpu.concatenate %152, %153 in 2 : vector<4x16x4xf32>, vector<4x16x4xf32> -> vector<4x16x8xf32>
    %155 = vector.broadcast %3 : vector<1x16x8xf32> to vector<4x16x8xf32>
    %156 = arith.mulf %143, %155 : vector<4x16x8xf32>
    %157 = vector.broadcast %5 : vector<1x16x8xf32> to vector<4x16x8xf32>
    %158 = arith.mulf %154, %157 : vector<4x16x8xf32>
    %159 = arith.addf %156, %158 : vector<4x16x8xf32>
    "tpu.trace_start"() <{level = 10 : i32, message = "hqd,hkd->hqk"}> : () -> ()
    %cst_52 = arith.constant dense<0.000000e+00> : vector<4x16x16xf32>
    %160 = tpu.matmul %151, %159, %cst_52 {dimension_numbers = #tpu.dot_dimension_numbers<[2], [2], [1], [1], [0, 0, 0, 1, 1, 1], [0], [0]>} : vector<4x16x8xf32>, vector<4x16x8xf32>, vector<4x16x16xf32> -> vector<4x16x16xf32>
    "tpu.trace_stop"() : () -> ()
    %161 = vector.broadcast %7 : vector<1x16x16xf32> to vector<4x16x16xf32>
    %162 = arith.addf %160, %161 : vector<4x16x16xf32>
    %cst_53 = arith.constant dense<0xFF800000> : vector<4x16xf32>
    %163 = vector.multi_reduction <maximumf>, %162, %cst_53 [2] : vector<4x16x16xf32> to vector<4x16xf32>
    %164 = vector.shape_cast %163 : vector<4x16xf32> to vector<4x16x1xf32>
    %165 = vector.broadcast %164 : vector<4x16x1xf32> to vector<4x16x16xf32>
    %166 = arith.subf %162, %165 : vector<4x16x16xf32>
    %167 = math.exp %166 : vector<4x16x16xf32>
    %cst_54 = arith.constant dense<0.000000e+00> : vector<4x16xf32>
    %168 = vector.multi_reduction <add>, %167, %cst_54 [2] : vector<4x16x16xf32> to vector<4x16xf32>
    %169 = vector.shape_cast %168 : vector<4x16xf32> to vector<4x16x1xf32>
    %170 = vector.broadcast %169 : vector<4x16x1xf32> to vector<4x16x16xf32>
    %171 = arith.divf %167, %170 : vector<4x16x16xf32>
    "tpu.trace_start"() <{level = 10 : i32, message = "hqk,hkd->hqd"}> : () -> ()
    %cst_55 = arith.constant dense<0.000000e+00> : vector<4x16x8xf32>
    %172 = tpu.matmul %171, %159, %cst_55 {dimension_numbers = #tpu.dot_dimension_numbers<[2], [1], [1], [2], [0, 0, 0, 1, 1, 2], [0], [0]>} : vector<4x16x16xf32>, vector<4x16x8xf32>, vector<4x16x8xf32> -> vector<4x16x8xf32>
    "tpu.trace_stop"() : () -> ()
    %173 = vector.extract_strided_slice %172 {offsets = [0, 0, 0], sizes = [1, 16, 8], strides = [1, 1, 1]} : vector<4x16x8xf32> to vector<1x16x8xf32>
    %174 = vector.shape_cast %173 : vector<1x16x8xf32> to vector<16x8xf32>
    %175 = vector.extract_strided_slice %172 {offsets = [1, 0, 0], sizes = [1, 16, 8], strides = [1, 1, 1]} : vector<4x16x8xf32> to vector<1x16x8xf32>
    %176 = vector.shape_cast %175 : vector<1x16x8xf32> to vector<16x8xf32>
    %177 = vector.extract_strided_slice %172 {offsets = [2, 0, 0], sizes = [1, 16, 8], strides = [1, 1, 1]} : vector<4x16x8xf32> to vector<1x16x8xf32>
    %178 = vector.shape_cast %177 : vector<1x16x8xf32> to vector<16x8xf32>
    %179 = vector.extract_strided_slice %172 {offsets = [3, 0, 0], sizes = [1, 16, 8], strides = [1, 1, 1]} : vector<4x16x8xf32> to vector<1x16x8xf32>
    %180 = vector.shape_cast %179 : vector<1x16x8xf32> to vector<16x8xf32>
    %181 = tpu.concatenate %174, %176, %178, %180 in 1 : vector<16x8xf32>, vector<16x8xf32>, vector<16x8xf32>, vector<16x8xf32> -> vector<16x32xf32>
    %cst_56 = arith.constant dense<0.000000e+00> : vector<16x32xf32>
    %182 = tpu.matmul %181, %108, %cst_56 {dimension_numbers = #tpu.dot_dimension_numbers<[1], [0], [0], [1], [0, 0, 1, 1], [], []>} : vector<16x32xf32>, vector<32x32xf32>, vector<16x32xf32> -> vector<16x32xf32>
    %183 = arith.addf %106, %182 : vector<16x32xf32>
    %184 = arith.mulf %183, %183 : vector<16x32xf32>
    %cst_57 = arith.constant dense<0.000000e+00> : vector<16xf32>
    %185 = vector.multi_reduction <add>, %184, %cst_57 [1] : vector<16x32xf32> to vector<16xf32>
    %186 = vector.shape_cast %185 : vector<16xf32> to vector<16x1xf32>
    %cst_58 = arith.constant 3.200000e+01 : f32
    %187 = vector.broadcast %cst_58 : f32 to vector<16x1xf32>
    %188 = arith.divf %186, %187 : vector<16x1xf32>
    %cst_59 = arith.constant 9.99999974E-6 : f32
    %189 = vector.broadcast %cst_59 : f32 to vector<16x1xf32>
    %190 = arith.addf %188, %189 : vector<16x1xf32>
    %191 = math.rsqrt %190 : vector<16x1xf32>
    %192 = vector.broadcast %191 : vector<16x1xf32> to vector<16x32xf32>
    %193 = arith.mulf %183, %192 : vector<16x32xf32>
    %194 = vector.broadcast %112 : vector<1x32xf32> to vector<16x32xf32>
    %195 = arith.mulf %193, %194 : vector<16x32xf32>
    %cst_60 = arith.constant dense<0.000000e+00> : vector<16x192xf32>
    %196 = tpu.matmul %195, %109, %cst_60 {dimension_numbers = #tpu.dot_dimension_numbers<[1], [0], [0], [1], [0, 0, 1, 1], [], []>} : vector<16x32xf32>, vector<32x192xf32>, vector<16x192xf32> -> vector<16x192xf32>
    %197 = vector.extract_strided_slice %196 {offsets = [0, 0], sizes = [16, 96], strides = [1, 1]} : vector<16x192xf32> to vector<16x96xf32>
    %198 = vector.extract_strided_slice %196 {offsets = [0, 96], sizes = [16, 96], strides = [1, 1]} : vector<16x192xf32> to vector<16x96xf32>
    %cst_61 = arith.constant 0.000000e+00 : f32
    %199 = vector.broadcast %cst_61 : f32 to vector<16x96xf32>
    %200 = arith.subf %199, %197 : vector<16x96xf32>
    %201 = math.exp %200 : vector<16x96xf32>
    %cst_62 = arith.constant 1.000000e+00 : f32
    %202 = vector.broadcast %cst_62 : f32 to vector<16x96xf32>
    %203 = arith.addf %202, %201 : vector<16x96xf32>
    %204 = arith.divf %197, %203 : vector<16x96xf32>
    %205 = arith.mulf %204, %198 : vector<16x96xf32>
    %cst_63 = arith.constant dense<0.000000e+00> : vector<16x32xf32>
    %206 = tpu.matmul %205, %110, %cst_63 {dimension_numbers = #tpu.dot_dimension_numbers<[1], [0], [0], [1], [0, 0, 1, 1], [], []>} : vector<16x96xf32>, vector<96x32xf32>, vector<16x32xf32> -> vector<16x32xf32>
    %207 = arith.addf %183, %206 : vector<16x32xf32>
    %c0_64 = arith.constant 0 : index
    %c480 = arith.constant 480 : index
    %208 = vector.load %arg2[%c0_64, %c480] : memref<128x800xf32, #tpu.memory_space<vmem>>, vector<32x64xf32>
    %c0_65 = arith.constant 0 : index
    %c544 = arith.constant 544 : index
    %209 = vector.load %arg2[%c0_65, %c544] : memref<128x800xf32, #tpu.memory_space<vmem>>, vector<32x32xf32>
    %c0_66 = arith.constant 0 : index
    %c576 = arith.constant 576 : index
    %210 = vector.load %arg2[%c0_66, %c576] : memref<128x800xf32, #tpu.memory_space<vmem>>, vector<32x192xf32>
    %c0_67 = arith.constant 0 : index
    %c768 = arith.constant 768 : index
    %211 = vector.load %arg2[%c0_67, %c768] : memref<128x800xf32, #tpu.memory_space<vmem>>, vector<96x32xf32>
    %c2_68 = arith.constant 2 : index
    %c32_69 = arith.constant 32 : index
    %212 = vector.load %arg3[%c2_68, %c32_69] : memref<16x64xf32, #tpu.memory_space<vmem>>, vector<1x32xf32>
    %c3_70 = arith.constant 3 : index
    %c32_71 = arith.constant 32 : index
    %213 = vector.load %arg3[%c3_70, %c32_71] : memref<16x64xf32, #tpu.memory_space<vmem>>, vector<1x32xf32>
    %214 = arith.mulf %207, %207 : vector<16x32xf32>
    %cst_72 = arith.constant dense<0.000000e+00> : vector<16xf32>
    %215 = vector.multi_reduction <add>, %214, %cst_72 [1] : vector<16x32xf32> to vector<16xf32>
    %216 = vector.shape_cast %215 : vector<16xf32> to vector<16x1xf32>
    %cst_73 = arith.constant 3.200000e+01 : f32
    %217 = vector.broadcast %cst_73 : f32 to vector<16x1xf32>
    %218 = arith.divf %216, %217 : vector<16x1xf32>
    %cst_74 = arith.constant 9.99999974E-6 : f32
    %219 = vector.broadcast %cst_74 : f32 to vector<16x1xf32>
    %220 = arith.addf %218, %219 : vector<16x1xf32>
    %221 = math.rsqrt %220 : vector<16x1xf32>
    %222 = vector.broadcast %221 : vector<16x1xf32> to vector<16x32xf32>
    %223 = arith.mulf %207, %222 : vector<16x32xf32>
    %224 = vector.broadcast %212 : vector<1x32xf32> to vector<16x32xf32>
    %225 = arith.mulf %223, %224 : vector<16x32xf32>
    %cst_75 = arith.constant dense<0.000000e+00> : vector<16x64xf32>
    %226 = tpu.matmul %225, %208, %cst_75 {dimension_numbers = #tpu.dot_dimension_numbers<[1], [0], [0], [1], [0, 0, 1, 1], [], []>} : vector<16x32xf32>, vector<32x64xf32>, vector<16x64xf32> -> vector<16x64xf32>
    %227 = vector.extract_strided_slice %226 {offsets = [0, 0], sizes = [16, 8], strides = [1, 1]} : vector<16x64xf32> to vector<16x8xf32>
    %228 = vector.extract_strided_slice %226 {offsets = [0, 8], sizes = [16, 8], strides = [1, 1]} : vector<16x64xf32> to vector<16x8xf32>
    %229 = vector.extract_strided_slice %226 {offsets = [0, 16], sizes = [16, 8], strides = [1, 1]} : vector<16x64xf32> to vector<16x8xf32>
    %230 = vector.extract_strided_slice %226 {offsets = [0, 24], sizes = [16, 8], strides = [1, 1]} : vector<16x64xf32> to vector<16x8xf32>
    %231 = vector.shape_cast %227 : vector<16x8xf32> to vector<1x16x8xf32>
    %232 = vector.shape_cast %228 : vector<16x8xf32> to vector<1x16x8xf32>
    %233 = vector.shape_cast %229 : vector<16x8xf32> to vector<1x16x8xf32>
    %234 = vector.shape_cast %230 : vector<16x8xf32> to vector<1x16x8xf32>
    %235 = tpu.concatenate %231, %232, %233, %234 in 0 : vector<1x16x8xf32>, vector<1x16x8xf32>, vector<1x16x8xf32>, vector<1x16x8xf32> -> vector<4x16x8xf32>
    %236 = vector.extract_strided_slice %226 {offsets = [0, 32], sizes = [16, 8], strides = [1, 1]} : vector<16x64xf32> to vector<16x8xf32>
    %237 = vector.extract_strided_slice %226 {offsets = [0, 40], sizes = [16, 8], strides = [1, 1]} : vector<16x64xf32> to vector<16x8xf32>
    %238 = vector.extract_strided_slice %226 {offsets = [0, 48], sizes = [16, 8], strides = [1, 1]} : vector<16x64xf32> to vector<16x8xf32>
    %239 = vector.extract_strided_slice %226 {offsets = [0, 56], sizes = [16, 8], strides = [1, 1]} : vector<16x64xf32> to vector<16x8xf32>
    %240 = vector.shape_cast %236 : vector<16x8xf32> to vector<1x16x8xf32>
    %241 = vector.shape_cast %237 : vector<16x8xf32> to vector<1x16x8xf32>
    %242 = vector.shape_cast %238 : vector<16x8xf32> to vector<1x16x8xf32>
    %243 = vector.shape_cast %239 : vector<16x8xf32> to vector<1x16x8xf32>
    %244 = tpu.concatenate %240, %241, %242, %243 in 0 : vector<1x16x8xf32>, vector<1x16x8xf32>, vector<1x16x8xf32>, vector<1x16x8xf32> -> vector<4x16x8xf32>
    %245 = vector.extract_strided_slice %235 {offsets = [0, 0, 4], sizes = [4, 16, 4], strides = [1, 1, 1]} : vector<4x16x8xf32> to vector<4x16x4xf32>
    %246 = vector.extract_strided_slice %235 {offsets = [0, 0, 0], sizes = [4, 16, 4], strides = [1, 1, 1]} : vector<4x16x8xf32> to vector<4x16x4xf32>
    %247 = tpu.concatenate %245, %246 in 2 : vector<4x16x4xf32>, vector<4x16x4xf32> -> vector<4x16x8xf32>
    %248 = vector.broadcast %3 : vector<1x16x8xf32> to vector<4x16x8xf32>
    %249 = arith.mulf %235, %248 : vector<4x16x8xf32>
    %250 = vector.broadcast %5 : vector<1x16x8xf32> to vector<4x16x8xf32>
    %251 = arith.mulf %247, %250 : vector<4x16x8xf32>
    %252 = arith.addf %249, %251 : vector<4x16x8xf32>
    %253 = vector.extract_strided_slice %244 {offsets = [0, 0, 4], sizes = [4, 16, 4], strides = [1, 1, 1]} : vector<4x16x8xf32> to vector<4x16x4xf32>
    %254 = vector.extract_strided_slice %244 {offsets = [0, 0, 0], sizes = [4, 16, 4], strides = [1, 1, 1]} : vector<4x16x8xf32> to vector<4x16x4xf32>
    %255 = tpu.concatenate %253, %254 in 2 : vector<4x16x4xf32>, vector<4x16x4xf32> -> vector<4x16x8xf32>
    %256 = vector.broadcast %3 : vector<1x16x8xf32> to vector<4x16x8xf32>
    %257 = arith.mulf %244, %256 : vector<4x16x8xf32>
    %258 = vector.broadcast %5 : vector<1x16x8xf32> to vector<4x16x8xf32>
    %259 = arith.mulf %255, %258 : vector<4x16x8xf32>
    %260 = arith.addf %257, %259 : vector<4x16x8xf32>
    "tpu.trace_start"() <{level = 10 : i32, message = "hqd,hkd->hqk"}> : () -> ()
    %cst_76 = arith.constant dense<0.000000e+00> : vector<4x16x16xf32>
    %261 = tpu.matmul %252, %260, %cst_76 {dimension_numbers = #tpu.dot_dimension_numbers<[2], [2], [1], [1], [0, 0, 0, 1, 1, 1], [0], [0]>} : vector<4x16x8xf32>, vector<4x16x8xf32>, vector<4x16x16xf32> -> vector<4x16x16xf32>
    "tpu.trace_stop"() : () -> ()
    %262 = vector.broadcast %7 : vector<1x16x16xf32> to vector<4x16x16xf32>
    %263 = arith.addf %261, %262 : vector<4x16x16xf32>
    %cst_77 = arith.constant dense<0xFF800000> : vector<4x16xf32>
    %264 = vector.multi_reduction <maximumf>, %263, %cst_77 [2] : vector<4x16x16xf32> to vector<4x16xf32>
    %265 = vector.shape_cast %264 : vector<4x16xf32> to vector<4x16x1xf32>
    %266 = vector.broadcast %265 : vector<4x16x1xf32> to vector<4x16x16xf32>
    %267 = arith.subf %263, %266 : vector<4x16x16xf32>
    %268 = math.exp %267 : vector<4x16x16xf32>
    %cst_78 = arith.constant dense<0.000000e+00> : vector<4x16xf32>
    %269 = vector.multi_reduction <add>, %268, %cst_78 [2] : vector<4x16x16xf32> to vector<4x16xf32>
    %270 = vector.shape_cast %269 : vector<4x16xf32> to vector<4x16x1xf32>
    %271 = vector.broadcast %270 : vector<4x16x1xf32> to vector<4x16x16xf32>
    %272 = arith.divf %268, %271 : vector<4x16x16xf32>
    "tpu.trace_start"() <{level = 10 : i32, message = "hqk,hkd->hqd"}> : () -> ()
    %cst_79 = arith.constant dense<0.000000e+00> : vector<4x16x8xf32>
    %273 = tpu.matmul %272, %260, %cst_79 {dimension_numbers = #tpu.dot_dimension_numbers<[2], [1], [1], [2], [0, 0, 0, 1, 1, 2], [0], [0]>} : vector<4x16x16xf32>, vector<4x16x8xf32>, vector<4x16x8xf32> -> vector<4x16x8xf32>
    "tpu.trace_stop"() : () -> ()
    %274 = vector.extract_strided_slice %273 {offsets = [0, 0, 0], sizes = [1, 16, 8], strides = [1, 1, 1]} : vector<4x16x8xf32> to vector<1x16x8xf32>
    %275 = vector.shape_cast %274 : vector<1x16x8xf32> to vector<16x8xf32>
    %276 = vector.extract_strided_slice %273 {offsets = [1, 0, 0], sizes = [1, 16, 8], strides = [1, 1, 1]} : vector<4x16x8xf32> to vector<1x16x8xf32>
    %277 = vector.shape_cast %276 : vector<1x16x8xf32> to vector<16x8xf32>
    %278 = vector.extract_strided_slice %273 {offsets = [2, 0, 0], sizes = [1, 16, 8], strides = [1, 1, 1]} : vector<4x16x8xf32> to vector<1x16x8xf32>
    %279 = vector.shape_cast %278 : vector<1x16x8xf32> to vector<16x8xf32>
    %280 = vector.extract_strided_slice %273 {offsets = [3, 0, 0], sizes = [1, 16, 8], strides = [1, 1, 1]} : vector<4x16x8xf32> to vector<1x16x8xf32>
    %281 = vector.shape_cast %280 : vector<1x16x8xf32> to vector<16x8xf32>
    %282 = tpu.concatenate %275, %277, %279, %281 in 1 : vector<16x8xf32>, vector<16x8xf32>, vector<16x8xf32>, vector<16x8xf32> -> vector<16x32xf32>
    %cst_80 = arith.constant dense<0.000000e+00> : vector<16x32xf32>
    %283 = tpu.matmul %282, %209, %cst_80 {dimension_numbers = #tpu.dot_dimension_numbers<[1], [0], [0], [1], [0, 0, 1, 1], [], []>} : vector<16x32xf32>, vector<32x32xf32>, vector<16x32xf32> -> vector<16x32xf32>
    %284 = arith.addf %207, %283 : vector<16x32xf32>
    %285 = arith.mulf %284, %284 : vector<16x32xf32>
    %cst_81 = arith.constant dense<0.000000e+00> : vector<16xf32>
    %286 = vector.multi_reduction <add>, %285, %cst_81 [1] : vector<16x32xf32> to vector<16xf32>
    %287 = vector.shape_cast %286 : vector<16xf32> to vector<16x1xf32>
    %cst_82 = arith.constant 3.200000e+01 : f32
    %288 = vector.broadcast %cst_82 : f32 to vector<16x1xf32>
    %289 = arith.divf %287, %288 : vector<16x1xf32>
    %cst_83 = arith.constant 9.99999974E-6 : f32
    %290 = vector.broadcast %cst_83 : f32 to vector<16x1xf32>
    %291 = arith.addf %289, %290 : vector<16x1xf32>
    %292 = math.rsqrt %291 : vector<16x1xf32>
    %293 = vector.broadcast %292 : vector<16x1xf32> to vector<16x32xf32>
    %294 = arith.mulf %284, %293 : vector<16x32xf32>
    %295 = vector.broadcast %213 : vector<1x32xf32> to vector<16x32xf32>
    %296 = arith.mulf %294, %295 : vector<16x32xf32>
    %cst_84 = arith.constant dense<0.000000e+00> : vector<16x192xf32>
    %297 = tpu.matmul %296, %210, %cst_84 {dimension_numbers = #tpu.dot_dimension_numbers<[1], [0], [0], [1], [0, 0, 1, 1], [], []>} : vector<16x32xf32>, vector<32x192xf32>, vector<16x192xf32> -> vector<16x192xf32>
    %298 = vector.extract_strided_slice %297 {offsets = [0, 0], sizes = [16, 96], strides = [1, 1]} : vector<16x192xf32> to vector<16x96xf32>
    %299 = vector.extract_strided_slice %297 {offsets = [0, 96], sizes = [16, 96], strides = [1, 1]} : vector<16x192xf32> to vector<16x96xf32>
    %cst_85 = arith.constant 0.000000e+00 : f32
    %300 = vector.broadcast %cst_85 : f32 to vector<16x96xf32>
    %301 = arith.subf %300, %298 : vector<16x96xf32>
    %302 = math.exp %301 : vector<16x96xf32>
    %cst_86 = arith.constant 1.000000e+00 : f32
    %303 = vector.broadcast %cst_86 : f32 to vector<16x96xf32>
    %304 = arith.addf %303, %302 : vector<16x96xf32>
    %305 = arith.divf %298, %304 : vector<16x96xf32>
    %306 = arith.mulf %305, %299 : vector<16x96xf32>
    %cst_87 = arith.constant dense<0.000000e+00> : vector<16x32xf32>
    %307 = tpu.matmul %306, %211, %cst_87 {dimension_numbers = #tpu.dot_dimension_numbers<[1], [0], [0], [1], [0, 0, 1, 1], [], []>} : vector<16x96xf32>, vector<96x32xf32>, vector<16x32xf32> -> vector<16x32xf32>
    %308 = arith.addf %284, %307 : vector<16x32xf32>
    %c4_88 = arith.constant 4 : index
    %c32_89 = arith.constant 32 : index
    %309 = vector.load %arg3[%c4_88, %c32_89] : memref<16x64xf32, #tpu.memory_space<vmem>>, vector<1x32xf32>
    %310 = vector.extract_strided_slice %308 {offsets = [7, 0], sizes = [1, 32], strides = [1, 1]} : vector<16x32xf32> to vector<1x32xf32>
    %311 = vector.extract_strided_slice %308 {offsets = [15, 0], sizes = [1, 32], strides = [1, 1]} : vector<16x32xf32> to vector<1x32xf32>
    %312 = tpu.concatenate %310, %311 in 0 : vector<1x32xf32>, vector<1x32xf32> -> vector<2x32xf32>
    %313 = arith.mulf %312, %312 : vector<2x32xf32>
    %cst_90 = arith.constant dense<0.000000e+00> : vector<2xf32>
    %314 = vector.multi_reduction <add>, %313, %cst_90 [1] : vector<2x32xf32> to vector<2xf32>
    %315 = vector.shape_cast %314 : vector<2xf32> to vector<2x1xf32>
    %cst_91 = arith.constant 3.200000e+01 : f32
    %316 = vector.broadcast %cst_91 : f32 to vector<2x1xf32>
    %317 = arith.divf %315, %316 : vector<2x1xf32>
    %cst_92 = arith.constant 9.99999974E-6 : f32
    %318 = vector.broadcast %cst_92 : f32 to vector<2x1xf32>
    %319 = arith.addf %317, %318 : vector<2x1xf32>
    %320 = math.rsqrt %319 : vector<2x1xf32>
    %321 = vector.broadcast %320 : vector<2x1xf32> to vector<2x32xf32>
    %322 = arith.mulf %312, %321 : vector<2x32xf32>
    %323 = vector.broadcast %309 : vector<1x32xf32> to vector<2x32xf32>
    %324 = arith.mulf %322, %323 : vector<2x32xf32>
    %cst_93 = arith.constant dense<0.000000e+00> : vector<2x128xf32>
    %325 = tpu.matmul %324, %1, %cst_93 {dimension_numbers = #tpu.dot_dimension_numbers<[1], [0], [0], [1], [0, 0, 1, 1], [], []>} : vector<2x32xf32>, vector<32x128xf32>, vector<2x128xf32> -> vector<2x128xf32>
    %c0_94 = arith.constant 0 : index
    %c0_95 = arith.constant 0 : index
    %326 = vector.load %arg4[%c0_94, %c0_95] : memref<2x128xf32, #tpu.memory_space<vmem>>, vector<2x128xf32>
    tpu.vector_store %arg4[%c0_94, %c0_95], %325 {strides = array<i32>} : memref<2x128xf32, #tpu.memory_space<vmem>>, vector<2x128xf32>,
    return
  }
  func.func @transform_0(%arg0: i32, %arg1: memref<16xi32, #tpu.memory_space<smem>>) -> (i32, i32) {
    %c0_i32 = arith.constant 0 : i32
    %c0_i32_0 = arith.constant 0 : i32
    %c0_i32_1 = arith.constant 0 : i32
    return %c0_i32, %c0_i32_0 : i32, i32
  }
  func.func @transform_1(%arg0: i32, %arg1: memref<16xi32, #tpu.memory_space<smem>>) -> (i32, i32) {
    %c0_i32 = arith.constant 0 : i32
    %c0_i32_0 = arith.constant 0 : i32
    %c0_i32_1 = arith.constant 0 : i32
    return %c0_i32, %c0_i32_0 : i32, i32
  }
  func.func @transform_2(%arg0: i32, %arg1: memref<16xi32, #tpu.memory_space<smem>>) -> (i32, i32) {
    %c0_i32 = arith.constant 0 : i32
    %c0_i32_0 = arith.constant 0 : i32
    %c0_i32_1 = arith.constant 0 : i32
    return %c0_i32, %c0_i32_0 : i32, i32
  }
}

</mosaic_0001>

<bundles_post_ra>
// kernel: tinyllama2_forward_pallas.1
= control target key start
LH: loop header
LB: loop body
LE: loop exit
PB: predicated region body
PF: predicated region fallthrough
CT: control target
= control target key end

     0   :  { %s5547_s0 = inlined_call_operand.vmem [shape: s32[16], index: 0, kind: input, shape index: {}]   ;;  %s5548_s1 = inlined_call_operand.vmem [shape: f32[128,800], index: 1, kind: input, shape index: {}]   ;;  %s5549_s2 = inlined_call_operand.vmem [shape: f32[16,64], index: 2, kind: input, shape index: {}]   ;;  %s5550_s3 = inlined_call_operand.hbm [shape: f32[2,128], index: 3, kind: output, shape index: {}]  }
   0x1   :  { %s8_s14 = sshll.u32 %s5547_s0, 4  ;;  %s9_s14 = int_to_ptr.vmem [resolvable:$true] %s8_s14 }
   0x2   :  { %s4399_s15 = scalar_lea.vmem %s9_s14, 16  ;;  %p4404_p1 = scmp.lt.s32.totalorder %s9_s14, %s9_s14 }
   0x3   :  { %p4400_p0 = scmp.ne.s32.totalorder %s9_s14, %s4399_s15  ;;  %p4405_p2 = scmp.lt.s32.totalorder %s4399_s15, %s4399_s15 }
   0x5   :  { %p4406_p3 = por %p4405_p2, %p4404_p1 }
   0x7   :  { %p4407_p4 = pnand %p4406_p3, %p4400_p0 }
   0x9   :  { %4410 = shalt.err (!%p4407_p4)  }
   0xa   :  { %s4437_s16 = smov [#allocation3]  }
   0xb   :  { %11 = dma.vmem_to_smem %s9_s14, 16, %s4437_s16, [#allocation2] }
   0xc   :  { %4433 = dma.done.wait [#allocation2], 16 }
   0xd   :  { %4434 = vsyncadd [#allocation2], 4294967280 }
   0xe   :  { %13 = sfence }
   0xf   :  { %v4481_v0 = vld [vmem:[%s5548_s1] sm:$0xff]  ;;  %v4486_v1 = vld [vmem:[%s5548_s1 + $0x38] sm:$0xff]  ;;  %v4491_v2 = vld [vmem:[%s5548_s1 + $0x70] sm:$0xff]  ;;  %v41_v3 = vlaneseq  ;;  %s4493_s22 = sld [smem:[#allocation3]]  ;;  %s4510_s29 = sld [smem:[#allocation3 + $0x1]]  ;;  %vm107_vm0 = vcmask 1040384  }
  0x10   :  { %v4289_v4 = vpack.i.bf16 %v4486_v1, %v4481_v0  ;;  %v3917_v5 = vpack.c.bf16 %v4486_v1, %v4481_v0  ;;  %v4502_v6 = vld [vmem:[%s5548_s1 + $0xa8] sm:$0xff]  ;;  %v23_v7 = vld [vmem:[%s5548_s1 + $0xe0] sm:$0xff]  ;;  %v24_v8 = vld [vmem:[%s5548_s1 + $0x118] sm:$0xff]  ;;  %s4525_s9 = sld [smem:[#allocation3 + $0x2]]  ;;  %s4538_s16 = sld [smem:[#allocation3 + $0x3]]  ;;  %vm109_vm1 = vcmask 1041408  }
  0x11   :  { %v4294_v9 = vpack.i.bf16 %v4502_v6, %v4491_v2  ;;  %v3921_v10 = vpack.c.bf16 %v4502_v6, %v4491_v2  ;;  %v25_v11 = vld [vmem:[%s5548_s1 + $0x150] sm:$0xff]  ;;  %v26_v12 = vld [vmem:[%s5548_s1 + $0x188] sm:$0xff]  ;;  %v27_v13 = vld [vmem:[%s5548_s1 + $0x1c0] sm:$0xff]  ;;  %v4536_v17 = vand.u32 127, %v41_v3  ;;  %s4540_s17 = sld [smem:[#allocation3 + $0x4]]  ;;  %v3925_v18 = vpack.c.bf16 %v24_v8, %v23_v7  ;;  %s4542_s18 = sld [smem:[#allocation3 + $0x5]] }
  0x12   :  { %3918 = vmatprep.subr.bf16.mxu0 %v3917_v5  ;;  %v28_v14 = vld [vmem:[%s5548_s1 + $0x1f8] sm:$0xff]  ;;  %v29_v15 = vld [vmem:[%s5548_s1 + $0x230] sm:$0xff]  ;;  %v30_v16 = vld [vmem:[%s5548_s1 + $0x268] sm:$0xff]  ;;  %v3929_v19 = vpack.c.bf16 %v26_v12, %v25_v11  ;;  %s4544_s19 = sld [smem:[#allocation3 + $0x6]]  ;;  %s4551_s0 = sld [smem:[#allocation3 + $0x7]]  ;;  %vm111_vm2 = vcmask 1042432  }
  0x13   :  { %3920 = vmatpush3.bf16.msra.mxu0 %v3917_v5  ;;  %v4546_v20 = vpack.c.bf16 %v28_v14, %v27_v13  ;;  %v4548_v21 = vpack.c.bf16 %v30_v16, %v29_v15  ;;  %s4553_s20 = sld [smem:[#allocation3 + $0x8]]  ;;  %vm113_vm4 = vcmask 1043456   ;;  %vm115_vm5 = vcmask 1044480   ;;  %s4557_s21 = sld [smem:[#allocation3 + $0x9]] }
  0x14   :  { %3922 = vmatprep.subr.bf16.mxu0 %v3921_v10  ;;  %s4559_s23 = sld [smem:[#allocation3 + $0xa]]  ;;  %v4438_v24 = vmov 0.0   ;;  %vm117_vm7 = vcmask 1045504   ;;  %vm119_vm9 = vcmask 1046528   ;;  %s4569_s24 = sld [smem:[#allocation3 + $0xc]] }
  0x15   :  { %v44_v22 = vstv %s4493_s22  ;;  %v48_v23 = vstv %s4510_s29  ;;  %s4567_s22 = sld [smem:[#allocation3 + $0xb]]  ;;  %s4575_s25 = sld [smem:[#allocation3 + $0xd]] }
  0x16   :  { %vm45_vm3 = vcmp.eq.s32.totalorder %v4536_v17, %v44_v22  ;;  %vm49_vm6 = vcmp.eq.s32.totalorder %v4536_v17, %v48_v23  ;;  %v52_v26 = vstv %s4525_s9  ;;  %v56_v28 = vstv %s4538_s16 }
  0x17   :  { %3924 = vmatpush3.bf16.msra.mxu0 %v3921_v10  ;;  %v46_v25 = vsel %vm45_vm3, 1.0, %v4438_v24  ;;  %v50_v27 = vsel %vm49_vm6, 1.0, %v4438_v24  ;;  %vm53_vm8 = vcmp.eq.s32.totalorder %v4536_v17, %v52_v26  ;;  %vm57_vm10 = vcmp.eq.s32.totalorder %v4536_v17, %v56_v28 }
  0x18   :  { %3926 = vmatprep.subr.bf16.mxu0 %v3925_v18  ;;  %v54_v29 = vsel %vm53_vm8, 1.0, %v4438_v24  ;;  %v60_v30 = vstv %s4540_s17  ;;  %v108_v31 = vsel %vm107_vm0, %v46_v25, %v50_v27 }
  0x19   :  { %14 = vsyncpa [#allocation5], 0  ;;  %v58_v32 = vsel %vm57_vm10, 1.0, %v4438_v24  ;;  %vm61_vm11 = vcmp.eq.s32.totalorder %v4536_v17, %v60_v30  ;;  %v64_v33 = vstv %s4542_s18  ;;  %v68_v34 = vstv %s4544_s19  ;;  %s4585_s26 = sld [smem:[#allocation3 + $0xe]]  ;;  %s4599_s27 = sld [smem:[#allocation3 + $0xf]]  ;;  %v31_v53 = vld [vmem:[%s5548_s1 + $0x2a0] sm:$0xff] }
  0x1a   :  { %v62_v35 = vsel %vm61_vm11, 1.0, %v4438_v24  ;;  %vm65_vm12 = vcmp.eq.s32.totalorder %v4536_v17, %v64_v33  ;;  %vm69_vm13 = vcmp.eq.s32.totalorder %v4536_v17, %v68_v34  ;;  %v72_v36 = vstv %s4551_s0  ;;  %v32_v54 = vld [vmem:[%s5548_s1 + $0x2d8] sm:$0xff]  ;;  %v33_v63 = vld [vmem:[%s5548_s1 + $0x310] sm:$0xff]  ;;  %v34_v3 = vld [vmem:[%s5548_s1 + $0x348] sm:$0xff]  ;;  %s4439_s17 = smov 96   ;;  %s4445_s28 = smov 32  }
  0x1b   :  { %3928 = vmatpush3.bf16.msra.mxu0 %v3925_v18  ;;  %v66_v37 = vsel %vm65_vm12, 1.0, %v4438_v24  ;;  %v70_v38 = vsel %vm69_vm13, 1.0, %v4438_v24  ;;  %vm73_vm14 = vcmp.eq.s32.totalorder %v4536_v17, %v72_v36  ;;  %v110_v39 = vsel %vm109_vm1, %v108_v31, %v54_v29  ;;  %v35_v18 = vld [vmem:[%s5548_s1 + $0x8] sm:$0xff]  ;;  %v3452_v31 = vld [vmem:[%s5549_s2] ss:$0 sm:$0xff]  ;;  %s4446_s29 = smov 124  }
  0x1c   :  { %3930 = vmatprep.subr.bf16.mxu0 %v3929_v19  ;;  %v74_v40 = vsel %vm73_vm14, 1.0, %v4438_v24  ;;  %v112_v41 = vsel %vm111_vm2, %v110_v39, %v58_v32  ;;  %v76_v42 = vstv %s4553_s20  ;;  %v80_v43 = vstv %s4557_s21  ;;  %v4699_v39 = vld [vmem:[%s5549_s2] sm:$0xff]  ;;  %s4440_s21 = smov 120   ;;  %s4447_s30 = smov 4  }
  0x1d   :  { %v114_v44 = vsel %vm113_vm4, %v112_v41, %v62_v35  ;;  %vm77_vm15 = vcmp.eq.s32.totalorder %v4536_v17, %v76_v42  ;;  %vm81_vm3 = vcmp.eq.s32.totalorder %v4536_v17, %v80_v43  ;;  %v84_v45 = vstv %s4559_s23  ;;  %s4441_s23 = smov 92   ;;  %s4448_s4 = smov 8  }
  0x1e   :  { %v116_v46 = vsel %vm115_vm5, %v114_v44, %v66_v37  ;;  %v78_v47 = vsel %vm77_vm15, 1.0, %v4438_v24  ;;  %v82_v48 = vsel %vm81_vm3, 1.0, %v4438_v24  ;;  %vm85_vm6 = vcmp.eq.s32.totalorder %v4536_v17, %v84_v45  ;;  %s4449_s5 = smov 16   ;;  %s4450_s6 = smov 24  }
  0x1f   :  { %3932 = vmatpush3.bf16.msra.mxu0 %v3929_v19  ;;  %v118_v49 = vsel %vm117_vm7, %v116_v46, %v70_v38  ;;  %v86_v50 = vsel %vm85_vm6, 1.0, %v4438_v24  ;;  %v88_v51 = vstv %s4567_s22  ;;  %v92_v52 = vstv %s4569_s24  ;;  %v37_v19 = vld [vmem:[%s5548_s1 + $0x78] sm:$0xff]  ;;  %s4442_s22 = smov 100   ;;  %s4443_s24 = smov 112  }
  0x20   :  { %3934 = vmatprep.subr.bf16.mxu0 %v4546_v20  ;;  %v120_v55 = vsel %vm119_vm9, %v118_v49, %v74_v40  ;;  %vm89_vm8 = vcmp.eq.s32.totalorder %v4536_v17, %v88_v51  ;;  %vm93_vm10 = vcmp.eq.s32.totalorder %v4536_v17, %v92_v52  ;;  %v96_v56 = vstv %s4575_s25  ;;  %s4444_s25 = smov 104   ;;  %s4451_s18 = smov 64  }
  0x21   :  { %3693 = vmatprep.mubr.f32.mxu0 %v120_v55  ;;  %v90_v57 = vsel %vm89_vm8, 1.0, %v4438_v24  ;;  %v94_v58 = vsel %vm93_vm10, 1.0, %v4438_v24  ;;  %vm97_vm11 = vcmp.eq.s32.totalorder %v4536_v17, %v96_v56  ;;  %v100_v59 = vstv %s4585_s26  ;;  %v4734_v55 = vld [vmem:[%s5549_s2 + $0x8] sm:$0xff] }
  0x22   :  { %v121_v60 = vsel %vm107_vm0, %v78_v47, %v82_v48  ;;  %v3941_v61 = vpack.c.bf16 %v32_v54, %v31_v53  ;;  %v98_v7 = vsel %vm97_vm11, 1.0, %v4438_v24  ;;  %vm101_vm12 = vcmp.eq.s32.totalorder %v4536_v17, %v100_v59 }
  0x23   :  { %3936 = vmatpush3.bf16.msra.mxu0 %v4546_v20  ;;  %v122_v62 = vsel %vm109_vm1, %v121_v60, %v86_v50  ;;  %v104_v8 = vstv %s4599_s27  ;;  %v3945_v11 = vpack.c.bf16 %v34_v3, %v33_v63  ;;  %v102_v12 = vsel %vm101_vm12, 1.0, %v4438_v24 }
  0x24   :  { %3938 = vmatprep.subr.bf16.mxu0 %v4548_v21  ;;  %v123_v5 = vsel %vm111_vm2, %v122_v62, %v90_v57  ;;  %vm105_vm1 = vcmp.eq.s32.totalorder %v4536_v17, %v104_v8  ;;  %v36_v17 = vld [vmem:[%s5548_s1 + $0x40] sm:$0xff]  ;;  %vm223_vm2 = vcmask 261120   ;;  %vm1393_vm13 = vcmask 195584  }
  0x25   :  { %v124_v10 = vsel %vm113_vm4, %v123_v5, %v94_v58  ;;  %v106_v14 = vsel %vm105_vm1, 1.0, %v4438_v24  ;;  %v4655_v20 = vpack.i.bf16 %v36_v17, %v35_v18  ;;  %vm414_vm4 = vcmask 31744  }
  0x26   :  { %v125_v13 = vsel %vm115_vm5, %v124_v10, %v98_v7  ;;  %vm585_vm5 = vcmask 64512   ;;  %vm1678_vm14 = vcmask 785408   ;;  %vm3094_vm15 = vcmask 523264  }
  0x27   :  { %3940 = vmatpush3.bf16.msra.mxu0 %v4548_v21  ;;  %v126_v15 = vsel %vm117_vm7, %v125_v13, %v102_v12  ;;  %v38_v21 = vld [vmem:[%s5548_s1 + $0xb0] sm:$0xff]  ;;  %4150 = vrot.lane.b32.xlu1 %v4655_v20, %s4439_s17  ;;  %vm4869_vm7 = vmpackc.low %vm585_vm5, %vm585_vm5  ;;  %vm3312_vm3 = vcmask 254976   ;;  %vm4453_vm6 = vmmov 0  }
  0x28   :  { %3942 = vmatprep.subr.bf16.mxu0 %v3941_v61  ;;  %v127_v16 = vsel %vm119_vm9, %v126_v15, %v106_v14  ;;  %v4662_v22 = vpack.i.bf16 %v38_v21, %v37_v19  ;;  %vm944_vm9 = vcmask 130048  }
  0x2b   :  { %3944 = vmatpush3.bf16.msra.mxu0 %v3941_v61  ;;  %4155 = vrot.lane.b32.xlu1 %v4662_v22, %s4439_s17 }
  0x2c   :  { %3946 = vmatprep.subr.bf16.mxu0 %v3945_v11 }
  0x2f   :  { %3948 = vmatpush3.bf16.msra.mxu0 %v3945_v11 }
  0x32   :  { %3694 = vmatmul.mubr.f32.vlgmr.msra.gmra.mrb[0].mxu0 %v127_v16 }
  0x99   :  { %v4676_v30 = vpop.permute.xlu1 %4150 }
  0x9a   :  { %v4153_v32 = vunpack.i.h.bf16 %v4676_v30  ;;  %v4152_v33 = vunpack.i.l.bf16 %v4676_v30  ;;  %v3520_v30 = vld [vmem:[%s5549_s2 + $0x4] ss:$0 sm:$0xff] }
  0x9c   :  { %v3949_v34 = vpack.c.bf16 %v4153_v32, %v4152_v33 }
  0x9d   :  { %v4688_v35 = vpop.permute.xlu1 %4155 }
  0x9e   :  { %v4158_v36 = vunpack.i.h.bf16 %v4688_v35  ;;  %v4157_v37 = vunpack.i.l.bf16 %v4688_v35  ;;  %3950 = vmatprep.subr.bf16.mxu1 %v3949_v34 }
  0x9f   :  { %3952 = vmatpush3.bf16.msra.mxu1 %v3949_v34 }
  0xa0   :  { %v3953_v38 = vpack.c.bf16 %v4158_v36, %v4157_v37 }
  0xa2   :  { %3954 = vmatprep.subr.bf16.mxu1 %v3953_v38 }
  0xa3   :  { %3956 = vmatpush3.bf16.msra.mxu1 %v3953_v38 }
 0x105   :  { %v4666_v23 = vpop.f32.mrb[0].mxu0 }
 0x106   :  { %v4668_v25 = vpop.f32.mrb[1].mxu0  ;;  %v222_v26 = vmul.f32 %v4666_v23, %v4666_v23 }
 0x107   :  { %v221_v28 = vmul.f32 %v4668_v25, %v4668_v25 }
 0x108   :  { %v227_v27 = vsel %vm223_vm2, %v222_v26, 0.0 }
 0x109   :  { %228 = vadd.xlane.f32.xlu0 %v227_v27  ;;  %v224_v29 = vsel %vm223_vm2, %v221_v28, 0.0 }
 0x10d   :  { %225 = vadd.xlane.f32.xlu0 %v224_v29 }
 0x123   :  { %244 = vrot.lane.b32.xlu0 %v3452_v31, %s4439_s17 }
 0x127   :  { %433 = vrot.lane.b32.xlu0 %v4699_v39, %s4440_s21 }
 0x196   :  { %v229_v40 = vpop.xlane.xlu0 %228 }
 0x197   :  { %v232_v41 = vmul.f32 0.03125, %v229_v40 }
 0x199   :  { %v234_v42 = vadd.f32 1e-05, %v232_v41 }
 0x19a   :  { %v226_v43 = vpop.xlane.xlu0 %225 }
 0x19b   :  { %v231_v44 = vmul.f32 0.03125, %v226_v43  ;;  %4299 = vrsqrt.f32 %v234_v42 }
 0x19d   :  { %v233_v45 = vadd.f32 1e-05, %v231_v44 }
 0x19e   :  { %v245_v49 = vpop.permute.xlu0 %244 }
 0x19f   :  { %4301 = vrsqrt.f32 %v233_v45 }
 0x1a2   :  { %v4756_v60 = vpop.permute.xlu0 %433 }
 0x1a5   :  { %v4300_v46 = vpop.eup %4299 }
 0x1a6   :  { %v238_v48 = vmul.f32 %v4300_v46, %v4666_v23 }
 0x1a8   :  { %v248_v52 = vmul.f32 %v245_v49, %v238_v48 }
 0x1a9   :  { %v4302_v47 = vpop.eup %4301 }
 0x1aa   :  { %v237_v50 = vmul.f32 %v4302_v47, %v4668_v25 }
 0x1ac   :  { %v247_v51 = vmul.f32 %v245_v49, %v237_v50 }
 0x1ae   :  { %3704 = vmatprep.mubr.msk.f32.mxu1 %vm223_vm2, %v247_v51 }
 0x1af   :  { %3705 = vmatmul.mubr.msk.f32.vlgmr.msra.gmra.mrb[0].mxu1 %vm223_vm2, %v248_v52 }
 0x282   :  { %v4707_v53 = vpop.f32.mrb[0].mxu1 }
 0x283   :  { %350 = vrot.lane.b32.xlu1 %v4707_v53, %s4440_s21  ;;  %v4711_v54 = vpop.f32.mrb[1].mxu1 }
 0x284   :  { %455 = vrot.lane.b32.xlu0 %v4711_v54, %s4441_s23 }
 0x287   :  { %348 = vrot.lane.b32.xlu1 %v4711_v54, %s4440_s21 }
 0x288   :  { %479 = vrot.lane.b32.xlu0 %v4711_v54, %s4442_s22 }
 0x28b   :  { %356 = vrot.lane.b32.xlu1 %v4707_v53, %s4443_s24 }
 0x28f   :  { %354 = vrot.lane.b32.xlu1 %v4711_v54, %s4443_s24 }
 0x293   :  { %360 = vrot.lane.b32.xlu1 %v4711_v54, %s4444_s25 }
 0x297   :  { %362 = vrot.lane.b32.xlu1 %v4707_v53, %s4444_s25 }
 0x29b   :  { %457 = vrot.lane.b32.xlu1 %v4707_v53, %s4441_s23 }
 0x29f   :  { %481 = vrot.lane.b32.xlu1 %v4707_v53, %s4442_s22 }
 0x2a3   :  { %435 = vrot.lane.b32.xlu1 %v4734_v55, %s4440_s21 }
 0x2f5   :  { %v4738_v56 = vpop.permute.xlu1 %350 }
 0x2f6   :  { %461 = vrot.lane.b32.xlu1 %v4738_v56, %s4441_s23  ;;  %v456_v62 = vpop.permute.xlu0 %455 }
 0x2f9   :  { %v4742_v57 = vpop.permute.xlu1 %348 }
 0x2fa   :  { %485 = vrot.lane.b32.xlu1 %v4738_v56, %s4442_s22  ;;  %459 = vrot.lane.b32.xlu0 %v4742_v57, %s4441_s23  ;;  %v480_v5 = vpop.permute.xlu0 %479 }
 0x2fb   :  { %v503_v7 = vsel %vm414_vm4, %v456_v62, %v480_v5 }
 0x2fc   :  { %v525_v10 = vmul.f32 %v503_v7, %v4756_v60 }
 0x2fd   :  { %v4748_v58 = vpop.permute.xlu1 %356 }
 0x2fe   :  { %483 = vrot.lane.b32.xlu0 %v4742_v57, %s4442_s22  ;;  %465 = vrot.lane.b32.xlu1 %v4748_v58, %s4441_s23 }
 0x301   :  { %v4754_v59 = vpop.permute.xlu1 %354 }
 0x302   :  { %489 = vrot.lane.b32.xlu1 %v4748_v58, %s4442_s22  ;;  %463 = vrot.lane.b32.xlu0 %v4754_v59, %s4441_s23 }
 0x305   :  { %v4762_v61 = vpop.permute.xlu1 %360 }
 0x306   :  { %487 = vrot.lane.b32.xlu0 %v4754_v59, %s4442_s22 }
 0x309   :  { %v4766_v63 = vpop.permute.xlu1 %362 }
 0x30a   :  { %467 = vrot.lane.b32.xlu0 %v4762_v61, %s4441_s23  ;;  %469 = vrot.lane.b32.xlu1 %v4766_v63, %s4441_s23 }
 0x30d   :  { %v458_v3 = vpop.permute.xlu1 %457 }
 0x30e   :  { %491 = vrot.lane.b32.xlu0 %v4762_v61, %s4442_s22  ;;  %493 = vrot.lane.b32.xlu1 %v4766_v63, %s4442_s22 }
 0x311   :  { %v482_v8 = vpop.permute.xlu1 %481 }
 0x312   :  { %511 = vrot.lane.b32.xlu0 %v4699_v39, %s4445_s28  ;;  %513 = vrot.lane.b32.xlu1 %v4734_v55, %s4445_s28  ;;  %v504_v11 = vsel %vm414_vm4, %v458_v3, %v482_v8 }
 0x315   :  { %v4783_v12 = vpop.permute.xlu1 %435 }
 0x316   :  { %541 = vrot.lane.b32.xlu0 %v525_v10, %s4445_s28  ;;  %v526_v13 = vmul.f32 %v504_v11, %v4783_v12 }
 0x318   :  { %543 = vrot.lane.b32.xlu1 %v526_v13, %s4445_s28 }
 0x368   :  { %v462_v14 = vpop.permute.xlu1 %461 }
 0x36c   :  { %v486_v15 = vpop.permute.xlu1 %485  ;;  %v460_v16 = vpop.permute.xlu0 %459 }
 0x36d   :  { %v506_v18 = vsel %vm414_vm4, %v462_v14, %v486_v15 }
 0x36e   :  { %v528_v17 = vmul.f32 %v506_v18, %v4783_v12 }
 0x370   :  { %547 = vrot.lane.b32.xlu1 %v528_v17, %s4445_s28  ;;  %v466_v19 = vpop.permute.xlu1 %465  ;;  %v484_v21 = vpop.permute.xlu0 %483 }
 0x371   :  { %v505_v26 = vsel %vm414_vm4, %v460_v16, %v484_v21 }
 0x372   :  { %v527_v27 = vmul.f32 %v505_v26, %v4756_v60 }
 0x374   :  { %v490_v28 = vpop.permute.xlu1 %489  ;;  %545 = vrot.lane.b32.xlu0 %v527_v27, %s4445_s28  ;;  %v464_v29 = vpop.permute.xlu0 %463 }
 0x375   :  { %v508_v31 = vsel %vm414_vm4, %v466_v19, %v490_v28 }
 0x376   :  { %v530_v34 = vmul.f32 %v508_v31, %v4783_v12 }
 0x378   :  { %551 = vrot.lane.b32.xlu1 %v530_v34, %s4445_s28  ;;  %v488_v38 = vpop.permute.xlu0 %487 }
 0x379   :  { %v507_v40 = vsel %vm414_vm4, %v464_v29, %v488_v38 }
 0x37a   :  { %v529_v41 = vmul.f32 %v507_v40, %v4756_v60 }
 0x37c   :  { %v470_v42 = vpop.permute.xlu1 %469  ;;  %549 = vrot.lane.b32.xlu0 %v529_v41, %s4445_s28  ;;  %v468_v43 = vpop.permute.xlu0 %467 }
 0x380   :  { %v494_v44 = vpop.permute.xlu1 %493  ;;  %v492_v45 = vpop.permute.xlu0 %491 }
 0x381   :  { %v510_v46 = vsel %vm414_vm4, %v470_v42, %v494_v44  ;;  %v509_v47 = vsel %vm414_vm4, %v468_v43, %v492_v45 }
 0x382   :  { %v532_v48 = vmul.f32 %v510_v46, %v4783_v12  ;;  %v531_v49 = vmul.f32 %v509_v47, %v4756_v60 }
 0x384   :  { %555 = vrot.lane.b32.xlu1 %v532_v48, %s4445_s28  ;;  %553 = vrot.lane.b32.xlu0 %v531_v49, %s4445_s28  ;;  %v4806_v50 = vpop.permute.xlu0 %511  ;;  %v4808_v51 = vpop.permute.xlu1 %513  ;;  %v423_v48 = vmul.f32 %v4711_v54, %v4699_v39 }
 0x385   :  { %v517_v62 = vmul.f32 %v4806_v50, %v4711_v54  ;;  %v518_v3 = vmul.f32 %v4707_v53, %v4808_v51  ;;  %v520_v13 = vmul.f32 %v4808_v51, %v4738_v56  ;;  %v519_v14 = vmul.f32 %v4806_v50, %v4742_v57 }
 0x386   :  { %v522_v21 = vmul.f32 %v4808_v51, %v4748_v58  ;;  %v521_v26 = vmul.f32 %v4806_v50, %v4754_v59  ;;  %v524_v34 = vmul.f32 %v4808_v51, %v4766_v63  ;;  %v523_v38 = vmul.f32 %v4806_v50, %v4762_v61 }
 0x388   :  { %366 = vrot.lane.b32.xlu1 %v4711_v54, %s4446_s29  ;;  %390 = vrot.lane.b32.xlu0 %v4711_v54, %s4447_s30  ;;  %v542_v52 = vpop.permute.xlu0 %541 }
 0x389   :  { %v565_v7 = vadd.f32 %v542_v52, %v517_v62 }
 0x38a   :  { %v544_v5 = vpop.permute.xlu1 %543 }
 0x38b   :  { %v566_v8 = vadd.f32 %v544_v5, %v518_v3 }
 0x38c   :  { %368 = vrot.lane.b32.xlu1 %v4707_v53, %s4446_s29 }
 0x38d   :  { %v4159_v10 = vpack.i.bf16 %v566_v8, %v565_v7 }
 0x38f   :  { %4160 = vrot.lane.b32.xlu0 %v4159_v10, %s4439_s17 }
 0x390   :  { %394 = vrot.lane.b32.xlu1 %v4742_v57, %s4447_s30 }
 0x393   :  { %392 = vrot.lane.b32.xlu0 %v4707_v53, %s4447_s30 }
 0x397   :  { %370 = vrot.lane.b32.xlu0 %v4742_v57, %s4446_s29 }
 0x39b   :  { %372 = vrot.lane.b32.xlu0 %v4738_v56, %s4446_s29 }
 0x3e2   :  { %v548_v11 = vpop.permute.xlu1 %547 }
 0x3e3   :  { %v568_v16 = vadd.f32 %v548_v11, %v520_v13 }
 0x3e6   :  { %v546_v15 = vpop.permute.xlu0 %545 }
 0x3e7   :  { %v567_v18 = vadd.f32 %v546_v15, %v519_v14 }
 0x3e9   :  { %v4164_v17 = vpack.i.bf16 %v568_v16, %v567_v18  ;;  %v424_v16 = vmul.f32 %v4707_v53, %v4734_v55 }
 0x3ea   :  { %v552_v19 = vpop.permute.xlu1 %551 }
 0x3eb   :  { %4165 = vrot.lane.b32.xlu1 %v4164_v17, %s4439_s17  ;;  %v570_v28 = vadd.f32 %v552_v19, %v522_v21  ;;  %v425_v17 = vmul.f32 %v4742_v57, %v4699_v39 }
 0x3ee   :  { %v550_v27 = vpop.permute.xlu0 %549 }
 0x3ef   :  { %v569_v29 = vadd.f32 %v550_v27, %v521_v26  ;;  %396 = vrot.lane.b32.xlu1 %v4738_v56, %s4447_s30 }
 0x3f1   :  { %v4169_v31 = vpack.i.bf16 %v570_v28, %v569_v29 }
 0x3f3   :  { %374 = vrot.lane.b32.xlu1 %v4754_v59, %s4446_s29  ;;  %4170 = vrot.lane.b32.xlu0 %v4169_v31, %s4439_s17 }
 0x3f6   :  { %v556_v40 = vpop.permute.xlu1 %555  ;;  %v554_v41 = vpop.permute.xlu0 %553 }
 0x3f7   :  { %v572_v42 = vadd.f32 %v556_v40, %v524_v34  ;;  %v571_v43 = vadd.f32 %v554_v41, %v523_v38  ;;  %376 = vrot.lane.b32.xlu1 %v4748_v58, %s4446_s29  ;;  %398 = vrot.lane.b32.xlu0 %v4754_v59, %s4447_s30 }
 0x3f9   :  { %v4174_v44 = vpack.i.bf16 %v572_v42, %v571_v43  ;;  %v426_v42 = vmul.f32 %v4738_v56, %v4734_v55 }
 0x3fa   :  { %v367_v45 = vpop.permute.xlu1 %366  ;;  %v391_v46 = vpop.permute.xlu0 %390 }
 0x3fb   :  { %v415_v47 = vsel %vm414_vm4, %v367_v45, %v391_v46  ;;  %400 = vrot.lane.b32.xlu0 %v4748_v58, %s4447_s30  ;;  %4175 = vrot.lane.b32.xlu1 %v4174_v44, %s4439_s17 }
 0x3fc   :  { %v439_v49 = vmul.f32 %v4756_v60, %v415_v47 }
 0x3fe   :  { %v447_v52 = vadd.f32 %v439_v49, %v423_v48  ;;  %v369_v7 = vpop.permute.xlu1 %368 }
 0x3ff   :  { %378 = vrot.lane.b32.xlu0 %v4762_v61, %s4446_s29  ;;  %402 = vrot.lane.b32.xlu1 %v4762_v61, %s4447_s30 }
 0x400   :  { %3711 = vmatprep.mubr.msk.f32.mxu1 %vm585_vm5, %v447_v52  ;;  %v427_v52 = vmul.f32 %v4754_v59, %v4699_v39 }
 0x401   :  { %v4161_v62 = vpop.permute.xlu0 %4160 }
 0x402   :  { %v4163_v3 = vunpack.i.h.bf16 %v4161_v62  ;;  %v4162_v5 = vunpack.i.l.bf16 %v4161_v62  ;;  %v395_v14 = vpop.permute.xlu1 %394 }
 0x403   :  { %380 = vrot.lane.b32.xlu0 %v4766_v63, %s4446_s29  ;;  %404 = vrot.lane.b32.xlu1 %v4766_v63, %s4447_s30 }
 0x404   :  { %v4873_v8 = vpack.c.bf16 %v4163_v3, %v4162_v5 }
 0x405   :  { %v393_v10 = vpop.permute.xlu0 %392 }
 0x406   :  { %v416_v11 = vsel %vm414_vm4, %v369_v7, %v393_v10  ;;  %3959 = vmatprep.subr.msk.bf16.mxu1 %vm4869_vm7, %v4873_v8 }
 0x407   :  { %3962 = vmatpush3.bf16.xpose.msk.msra.mxu1 %vm4869_vm7, %v4873_v8  ;;  %581 = vrot.lane.b32.xlu1 %v4734_v55, %s4443_s24  ;;  %v440_v13 = vmul.f32 %v4783_v12, %v416_v11 }
 0x408   :  { %579 = vrot.lane.b32.xlu0 %v4699_v39, %s4443_s24 }
 0x409   :  { %v371_v15 = vpop.permute.xlu0 %370  ;;  %v448_v21 = vadd.f32 %v440_v13, %v424_v16  ;;  %v428_v13 = vmul.f32 %v4748_v58, %v4734_v55 }
 0x40a   :  { %v417_v18 = vsel %vm414_vm4, %v371_v15, %v395_v14 }
 0x40b   :  { %v441_v19 = vmul.f32 %v4756_v60, %v417_v18 }
 0x40d   :  { %v449_v26 = vadd.f32 %v441_v19, %v425_v17  ;;  %v373_v34 = vpop.permute.xlu0 %372  ;;  %v429_v19 = vmul.f32 %v4762_v61, %v4699_v39 }
 0x40e   :  { %3712 = vmatmul.mubr.msk.f32.vlgmr.msra.gmra.mrb[2].mxu1 %vm585_vm5, %v448_v21 }
 0x40f   :  { %3718 = vmatprep.mubr.msk.f32.mxu1 %vm585_vm5, %v449_v26 }
 0x45d   :  { %v4166_v27 = vpop.permute.xlu1 %4165 }
 0x45e   :  { %v4168_v28 = vunpack.i.h.bf16 %v4166_v27  ;;  %v4167_v29 = vunpack.i.l.bf16 %v4166_v27 }
 0x460   :  { %v4895_v31 = vpack.c.bf16 %v4168_v28, %v4167_v29  ;;  %v430_v29 = vmul.f32 %v4766_v63, %v4734_v55 }
 0x461   :  { %v397_v53 = vpop.permute.xlu1 %396 }
 0x462   :  { %v418_v38 = vsel %vm414_vm4, %v373_v34, %v397_v53  ;;  %3965 = vmatprep.subr.msk.bf16.mxu1 %vm4869_vm7, %v4895_v31 }
 0x463   :  { %3968 = vmatpush3.bf16.xpose.msk.msra.mxu1 %vm4869_vm7, %v4895_v31  ;;  %v442_v57 = vmul.f32 %v4783_v12, %v418_v38 }
 0x465   :  { %v375_v40 = vpop.permute.xlu1 %374  ;;  %v4171_v41 = vpop.permute.xlu0 %4170  ;;  %v450_v45 = vadd.f32 %v442_v57, %v426_v42 }
 0x466   :  { %v4173_v43 = vunpack.i.h.bf16 %v4171_v41  ;;  %v4172_v44 = vunpack.i.l.bf16 %v4171_v41 }
 0x468   :  { %v3969_v46 = vpack.c.bf16 %v4173_v43, %v4172_v44 }
 0x469   :  { %v377_v47 = vpop.permute.xlu1 %376  ;;  %v399_v48 = vpop.permute.xlu0 %398 }
 0x46a   :  { %v419_v49 = vsel %vm414_vm4, %v375_v40, %v399_v48  ;;  %3719 = vmatmul.mubr.msk.f32.vlgmr.msra.gmra.mrb[4].mxu1 %vm585_vm5, %v450_v45  ;;  %3971 = vmatprep.subr.msk.bf16.mxu1 %vm4869_vm7, %v3969_v46 }
 0x46b   :  { %v443_v62 = vmul.f32 %v4756_v60, %v419_v49  ;;  %3990 = vmatprep.subr.bf16.mxu0 %v3969_v46  ;;  %3974 = vmatpush3.bf16.xpose.msk.msra.mxu1 %vm4869_vm7, %v3969_v46 }
 0x46c   :  { %3992 = vmatpush3.bf16.msra.mxu0 %v3969_v46 }
 0x46d   :  { %v451_v56 = vadd.f32 %v443_v62, %v427_v52  ;;  %v4176_v3 = vpop.permute.xlu1 %4175  ;;  %v401_v5 = vpop.permute.xlu0 %400 }
 0x46e   :  { %v4178_v7 = vunpack.i.h.bf16 %v4176_v3  ;;  %v4177_v10 = vunpack.i.l.bf16 %v4176_v3  ;;  %v420_v11 = vsel %vm414_vm4, %v377_v47, %v401_v5 }
 0x46f   :  { %v444_v14 = vmul.f32 %v4783_v12, %v420_v11  ;;  %3725 = vmatprep.mubr.msk.f32.mxu1 %vm585_vm5, %v451_v56 }
 0x470   :  { %v4921_v59 = vpack.c.bf16 %v4178_v7, %v4177_v10 }
 0x471   :  { %v452_v15 = vadd.f32 %v444_v14, %v428_v13  ;;  %v403_v16 = vpop.permute.xlu1 %402  ;;  %v379_v18 = vpop.permute.xlu0 %378 }
 0x472   :  { %v421_v17 = vsel %vm414_vm4, %v379_v18, %v403_v16  ;;  %3977 = vmatprep.subr.msk.bf16.mxu1 %vm4869_vm7, %v4921_v59 }
 0x473   :  { %v445_v58 = vmul.f32 %v4756_v60, %v421_v17  ;;  %3726 = vmatmul.mubr.msk.f32.vlgmr.msra.gmra.mrb[6].mxu1 %vm585_vm5, %v452_v15 }
 0x474   :  { %3980 = vmatpush3.bf16.xpose.msk.msra.mxu1 %vm4869_vm7, %v4921_v59 }
 0x475   :  { %v453_v21 = vadd.f32 %v445_v58, %v429_v19  ;;  %3982 = vmatprep.subr.bf16.mxu1 %v4873_v8  ;;  %v405_v26 = vpop.permute.xlu1 %404  ;;  %v381_v27 = vpop.permute.xlu0 %380 }
 0x476   :  { %v422_v28 = vsel %vm414_vm4, %v381_v27, %v405_v26 }
 0x477   :  { %v446_v39 = vmul.f32 %v4783_v12, %v422_v28  ;;  %3732 = vmatprep.mubr.msk.f32.mxu1 %vm585_vm5, %v453_v21 }
 0x479   :  { %v454_v61 = vadd.f32 %v446_v39, %v430_v29  ;;  %v4943_v34 = vpop.permute.xlu1 %581 }
 0x47a   :  { %v4945_v53 = vpop.permute.xlu0 %579 }
 0x47b   :  { %3733 = vmatmul.mubr.msk.f32.vlgmr.msra.gmra.mrb[8].mxu1 %vm585_vm5, %v454_v61 }
 0x47c   :  { %3984 = vmatpush3.bf16.msra.mxu1 %v4873_v8 }
 0x47d   :  { %3986 = vmatprep.subr.bf16.mxu1 %v4895_v31 }
 0x4e1   :  { %v3713_v38 = vpop.f32.mrb[2].mxu1 }
 0x4e2   :  { %v668_v57 = vadd.f32 %v3713_v38, %v4943_v34  ;;  %v662_v55 = vpop.f32.mrb[3].mxu1 }
 0x4e3   :  { %v663_v63 = vadd.f32 %v662_v55, %v4945_v53 }
 0x4e4   :  { %v948_v40 = vsel %vm944_vm9, %v668_v57, -inf }
 0x4e5   :  { %949 = vmax.xlane.f32.xlu1 %v948_v40  ;;  %v945_v41 = vsel %vm944_vm9, %v663_v63, -inf }
 0x4e6   :  { %946 = vmax.xlane.f32.xlu0 %v945_v41 }
 0x53d   :  { %v3720_v8 = vpop.f32.mrb[4].mxu1 }
 0x53e   :  { %v759_v42 = vadd.f32 %v3720_v8, %v4943_v34  ;;  %v753_v43 = vpop.f32.mrb[5].mxu1 }
 0x53f   :  { %v754_v44 = vadd.f32 %v753_v43, %v4945_v53 }
 0x540   :  { %v954_v45 = vsel %vm944_vm9, %v759_v42, -inf }
 0x541   :  { %955 = vmax.xlane.f32.xlu0 %v954_v45  ;;  %v951_v46 = vsel %vm944_vm9, %v754_v44, -inf }
 0x545   :  { %952 = vmax.xlane.f32.xlu0 %v951_v46 }
 0x546   :  { %v3727_v47 = vpop.f32.mrb[6].mxu1 }
 0x547   :  { %v850_v48 = vadd.f32 %v3727_v47, %v4943_v34  ;;  %v844_v49 = vpop.f32.mrb[7].mxu1 }
 0x548   :  { %v845_v52 = vadd.f32 %v844_v49, %v4945_v53 }
 0x549   :  { %v960_v62 = vsel %vm944_vm9, %v850_v48, -inf }
 0x54a   :  { %961 = vmax.xlane.f32.xlu0 %v960_v62  ;;  %v957_v56 = vsel %vm944_vm9, %v845_v52, -inf }
 0x54b   :  { %958 = vmax.xlane.f32.xlu1 %v957_v56 }
 0x54e   :  { %v3734_v3 = vpop.f32.mrb[8].mxu1 }
 0x54f   :  { %v941_v5 = vadd.f32 %v3734_v3, %v4943_v34  ;;  %v935_v7 = vpop.f32.mrb[9].mxu1 }
 0x550   :  { %v936_v10 = vadd.f32 %v935_v7, %v4945_v53 }
 0x551   :  { %v966_v11 = vsel %vm944_vm9, %v941_v5, -inf }
 0x552   :  { %967 = vmax.xlane.f32.xlu0 %v966_v11  ;;  %v963_v13 = vsel %vm944_vm9, %v936_v10, -inf }
 0x553   :  { %964 = vmax.xlane.f32.xlu1 %v963_v13 }
 0x572   :  { %v950_v14 = vpop.xlane.xlu1 %949 }
 0x573   :  { %v970_v15 = vsub.f32 %v668_v57, %v950_v14  ;;  %v947_v16 = vpop.xlane.xlu0 %946 }
 0x574   :  { %v969_v18 = vsub.f32 %v663_v63, %v947_v16 }
 0x575   :  { %v979_v17 = vmul.f32 1.442695, %v970_v15 }
 0x576   :  { %v977_v19 = vmul.f32 1.442695, %v969_v18 }
 0x577   :  { %4303 = vpow2.f32 %v979_v17 }
 0x578   :  { %4305 = vpow2.f32 %v977_v19 }
 0x581   :  { %v4304_v58 = vpop.eup %4303 }
 0x582   :  { %v4306_v21 = vpop.eup %4305  ;;  %v996_v26 = vsel %vm944_vm9, %v4304_v58, 0.0 }
 0x583   :  { %997 = vadd.xlane.f32.xlu0 %v996_v26  ;;  %v993_v27 = vsel %vm944_vm9, %v4306_v21, 0.0 }
 0x584   :  { %994 = vadd.xlane.f32.xlu1 %v993_v27 }
 0x5ce   :  { %v956_v28 = vpop.xlane.xlu0 %955 }
 0x5cf   :  { %v972_v29 = vsub.f32 %v759_v42, %v956_v28 }
 0x5d1   :  { %v983_v39 = vmul.f32 1.442695, %v972_v29 }
 0x5d2   :  { %v953_v61 = vpop.xlane.xlu0 %952 }
 0x5d3   :  { %4307 = vpow2.f32 %v983_v39  ;;  %v971_v38 = vsub.f32 %v754_v44, %v953_v61 }
 0x5d5   :  { %v981_v57 = vmul.f32 1.442695, %v971_v38 }
 0x5d7   :  { %4309 = vpow2.f32 %v981_v57  ;;  %v962_v55 = vpop.xlane.xlu0 %961 }
 0x5d8   :  { %v974_v63 = vsub.f32 %v850_v48, %v962_v55  ;;  %v959_v40 = vpop.xlane.xlu1 %958 }
 0x5d9   :  { %v973_v41 = vsub.f32 %v845_v52, %v959_v40 }
 0x5da   :  { %v987_v8 = vmul.f32 1.442695, %v974_v63 }
 0x5db   :  { %v985_v43 = vmul.f32 1.442695, %v973_v41 }
 0x5dc   :  { %4311 = vpow2.f32 %v987_v8 }
 0x5dd   :  { %v4308_v45 = vpop.eup %4307  ;;  %4313 = vpow2.f32 %v985_v43 }
 0x5de   :  { %v1002_v46 = vsel %vm944_vm9, %v4308_v45, 0.0 }
 0x5df   :  { %1003 = vadd.xlane.f32.xlu0 %v1002_v46  ;;  %v968_v47 = vpop.xlane.xlu0 %967 }
 0x5e0   :  { %v976_v42 = vsub.f32 %v941_v5, %v968_v47  ;;  %v965_v49 = vpop.xlane.xlu1 %964 }
 0x5e1   :  { %v4310_v62 = vpop.eup %4309  ;;  %v975_v56 = vsub.f32 %v936_v10, %v965_v49 }
 0x5e2   :  { %v991_v44 = vmul.f32 1.442695, %v976_v42  ;;  %v999_v3 = vsel %vm944_vm9, %v4310_v62, 0.0 }
 0x5e3   :  { %v989_v7 = vmul.f32 1.442695, %v975_v56  ;;  %1000 = vadd.xlane.f32.xlu1 %v999_v3 }
 0x5e4   :  { %4315 = vpow2.f32 %v991_v44 }
 0x5e5   :  { %4317 = vpow2.f32 %v989_v7 }
 0x5e6   :  { %v4312_v48 = vpop.eup %4311 }
 0x5e7   :  { %v4314_v52 = vpop.eup %4313  ;;  %v1008_v11 = vsel %vm944_vm9, %v4312_v48, 0.0 }
 0x5e8   :  { %1009 = vadd.xlane.f32.xlu0 %v1008_v11  ;;  %v1005_v13 = vsel %vm944_vm9, %v4314_v52, 0.0 }
 0x5e9   :  { %1006 = vadd.xlane.f32.xlu1 %v1005_v13 }
 0x5ee   :  { %v4316_v14 = vpop.eup %4315 }
 0x5ef   :  { %v4318_v5 = vpop.eup %4317  ;;  %v1014_v15 = vsel %vm944_vm9, %v4316_v14, 0.0 }
 0x5f0   :  { %1015 = vadd.xlane.f32.xlu0 %v1014_v15  ;;  %v1011_v10 = vsel %vm944_vm9, %v4318_v5, 0.0 }
 0x5f1   :  { %1012 = vadd.xlane.f32.xlu1 %v1011_v10 }
 0x602   :  { %4180 = vrot.lane.b32.xlu1 %v4655_v20, %s4445_s28 }
 0x606   :  { %4185 = vrot.lane.b32.xlu0 %v4662_v22, %s4445_s28 }
 0x610   :  { %v998_v16 = vpop.xlane.xlu0 %997 }
 0x611   :  { %4319 = vrcp.f32 %v998_v16  ;;  %v995_v18 = vpop.xlane.xlu1 %994 }
 0x612   :  { %4321 = vrcp.f32 %v995_v18 }
 0x61b   :  { %v4320_v17 = vpop.eup %4319 }
 0x61c   :  { %v4322_v19 = vpop.eup %4321  ;;  %v1020_v27 = vmul.f32 %v4320_v17, %v4304_v58 }
 0x61d   :  { %v1018_v26 = vmul.f32 %v4322_v19, %v4306_v21 }
 0x61f   :  { %3739 = vmatprep.mubr.msk.f32.mxu1 %vm944_vm9, %v1018_v26 }
 0x620   :  { %3740 = vmatmul.mubr.msk.f32.vlgmr.msra.gmra.mrb[10].mxu1 %vm944_vm9, %v1020_v27 }
 0x621   :  { %3988 = vmatpush3.bf16.msra.mxu1 %v4895_v31 }
 0x622   :  { %3994 = vmatprep.subr.bf16.mxu1 %v4921_v59 }
 0x66c   :  { %v1004_v28 = vpop.xlane.xlu0 %1003 }
 0x66d   :  { %4323 = vrcp.f32 %v1004_v28 }
 0x670   :  { %v1001_v29 = vpop.xlane.xlu1 %1000 }
 0x671   :  { %4325 = vrcp.f32 %v1001_v29 }
 0x675   :  { %v1010_v20 = vpop.xlane.xlu0 %1009 }
 0x676   :  { %4327 = vrcp.f32 %v1010_v20  ;;  %v1007_v39 = vpop.xlane.xlu1 %1006 }
 0x677   :  { %4329 = vrcp.f32 %v1007_v39  ;;  %v4324_v61 = vpop.eup %4323 }
 0x678   :  { %v1024_v57 = vmul.f32 %v4324_v61, %v4308_v45 }
 0x67b   :  { %v4326_v38 = vpop.eup %4325 }
 0x67c   :  { %v1022_v21 = vmul.f32 %v4326_v38, %v4310_v62 }
 0x67d   :  { %v1016_v58 = vpop.xlane.xlu0 %1015 }
 0x67e   :  { %4331 = vrcp.f32 %v1016_v58  ;;  %v1013_v55 = vpop.xlane.xlu1 %1012  ;;  %3746 = vmatprep.mubr.msk.f32.mxu1 %vm944_vm9, %v1022_v21 }
 0x67f   :  { %4333 = vrcp.f32 %v1013_v55  ;;  %3747 = vmatmul.mubr.msk.f32.vlgmr.msra.gmra.mrb[12].mxu1 %vm944_vm9, %v1024_v57 }
 0x680   :  { %v4328_v31 = vpop.eup %4327  ;;  %3996 = vmatpush3.bf16.msra.mxu1 %v4921_v59 }
 0x681   :  { %v4330_v63 = vpop.eup %4329  ;;  %v1028_v41 = vmul.f32 %v4328_v31, %v4312_v48  ;;  %v4186_v44 = vpop.permute.xlu0 %4185 }
 0x682   :  { %v1026_v40 = vmul.f32 %v4330_v63, %v4314_v52  ;;  %v4181_v42 = vpop.permute.xlu1 %4180  ;;  %v4188_v3 = vunpack.i.h.bf16 %v4186_v44  ;;  %v4187_v7 = vunpack.i.l.bf16 %v4186_v44 }
 0x683   :  { %v4183_v49 = vunpack.i.h.bf16 %v4181_v42  ;;  %v4182_v62 = vunpack.i.l.bf16 %v4181_v42  ;;  %v207_v42 = vld [vmem:[%s5548_s1 + $0x80] sm:$0xff] }
 0x684   :  { %3753 = vmatprep.mubr.msk.f32.mxu0 %vm944_vm9, %v1026_v40  ;;  %v4001_v48 = vpack.c.bf16 %v4188_v3, %v4187_v7  ;;  %v5024_v40 = vld [vmem:[%s5548_s1 + $0x50] sm:$0xff]  ;;  %v211_v3 = vld [vmem:[%s5548_s1 + $0xf8] sm:$0xff] }
 0x685   :  { %3754 = vmatmul.mubr.msk.f32.vlgmr.msra.gmra.mrb[2].mxu0 %vm944_vm9, %v1028_v41  ;;  %v3997_v56 = vpack.c.bf16 %v4183_v49, %v4182_v62  ;;  %v203_v41 = vld [vmem:[%s5548_s1 + $0x10] sm:$0xff]  ;;  %v209_v49 = vld [vmem:[%s5548_s1 + $0xb8] sm:$0xff] }
 0x686   :  { %v4011_v62 = vpack.c.bf16 %v209_v49, %v207_v42  ;;  %v212_v7 = vld [vmem:[%s5548_s1 + $0x130] sm:$0xff] }
 0x687   :  { %3998 = vmatprep.subr.bf16.mxu0 %v3997_v56 }
 0x688   :  { %v4332_v8 = vpop.eup %4331  ;;  %4000 = vmatpush3.bf16.msra.mxu0 %v3997_v56 }
 0x689   :  { %v4334_v43 = vpop.eup %4333  ;;  %v1032_v46 = vmul.f32 %v4332_v8, %v4316_v14  ;;  %4002 = vmatprep.subr.bf16.mxu0 %v4001_v48 }
 0x68a   :  { %v1030_v45 = vmul.f32 %v4334_v43, %v4318_v5  ;;  %v205_v43 = vld [vmem:[%s5548_s1 + $0x48] sm:$0xff] }
 0x68c   :  { %3760 = vmatprep.mubr.msk.f32.mxu1 %vm944_vm9, %v1030_v45  ;;  %4004 = vmatpush3.bf16.msra.mxu0 %v4001_v48  ;;  %v5037_v45 = vld [vmem:[%s5548_s1 + $0x88] sm:$0xff] }
 0x68d   :  { %3761 = vmatmul.mubr.msk.f32.vlgmr.msra.gmra.mrb[14].mxu1 %vm944_vm9, %v1032_v46  ;;  %v5042_v46 = vld [vmem:[%s5548_s1 + $0xc0] sm:$0xff]  ;;  %v213_v48 = vld [vmem:[%s5548_s1 + $0x168] sm:$0xff] }
 0x68e   :  { %1587 = vmatprep.mubr.f32.mxu1 %v4438_v24  ;;  %v4194_v44 = vpack.i.bf16 %v5042_v46, %v5037_v45 }
 0x6f3   :  { %v3741_v59 = vpop.f32.mrb[10].mxu1 }
 0x6f4   :  { %v1107_v47 = vpop.f32.mrb[11].mxu1 }
 0x752   :  { %v3748_v52 = vpop.f32.mrb[12].mxu1 }
 0x753   :  { %1369 = vrot.lane.b32.xlu1 %v3748_v52, %s4448_s4  ;;  %v1190_v11 = vpop.f32.mrb[13].mxu1  ;;  %v214_v52 = vld [vmem:[%s5548_s1 + $0x1a0] sm:$0xff] }
 0x757   :  { %1367 = vrot.lane.b32.xlu1 %v1190_v11, %s4448_s4  ;;  %v4199_v11 = vpack.i.bf16 %v212_v7, %v211_v3 }
 0x758   :  { %v3755_v22 = vpop.f32.mrb[2].mxu0 }
 0x759   :  { %v1273_v13 = vpop.f32.mrb[3].mxu0 }
 0x75a   :  { %1375 = vrot.lane.b32.xlu0 %v1273_v13, %s4449_s5  ;;  %v215_v13 = vld [vmem:[%s5548_s1 + $0x1d8] sm:$0xff] }
 0x75b   :  { %1377 = vrot.lane.b32.xlu1 %v3755_v22, %s4449_s5  ;;  %v4204_v22 = vpack.i.bf16 %v214_v52, %v213_v48 }
 0x760   :  { %v3762_v14 = vpop.f32.mrb[14].mxu1 }
 0x761   :  { %1385 = vrot.lane.b32.xlu1 %v3762_v14, %s4450_s6  ;;  %v1356_v5 = vpop.f32.mrb[15].mxu1  ;;  %v216_v14 = vld [vmem:[%s5548_s1 + $0x210] sm:$0xff] }
 0x762   :  { %1383 = vrot.lane.b32.xlu0 %v1356_v5, %s4450_s6  ;;  %v217_v5 = vld [vmem:[%s5548_s1 + $0x248] sm:$0xff] }
 0x7c5   :  { %v1370_v15 = vpop.permute.xlu1 %1369 }
 0x7c6   :  { %v1390_v26 = vsel %vm585_vm5, %v3741_v59, %v1370_v15  ;;  %v4007_v59 = vpack.c.bf16 %v205_v43, %v203_v41  ;;  %v218_v15 = vld [vmem:[%s5548_s1 + $0x280] sm:$0xff] }
 0x7c9   :  { %v1368_v10 = vpop.permute.xlu1 %1367 }
 0x7ca   :  { %v1389_v17 = vsel %vm585_vm5, %v1107_v47, %v1368_v10  ;;  %v4009_v47 = vpack.c.bf16 %v5042_v46, %v5037_v45  ;;  %v4209_v10 = vpack.i.bf16 %v216_v14, %v215_v13 }
 0x7cc   :  { %v1376_v18 = vpop.permute.xlu0 %1375 }
 0x7cd   :  { %v1378_v16 = vpop.permute.xlu1 %1377  ;;  %v1391_v27 = vsel %vm944_vm9, %v1389_v17, %v1376_v18 }
 0x7ce   :  { %v1392_v29 = vsel %vm944_vm9, %v1390_v26, %v1378_v16  ;;  %v4214_v16 = vpack.i.bf16 %v218_v15, %v217_v5 }
 0x7d3   :  { %v1386_v19 = vpop.permute.xlu1 %1385 }
 0x7d4   :  { %v1384_v28 = vpop.permute.xlu0 %1383  ;;  %v1395_v39 = vsel %vm1393_vm13, %v1392_v29, %v1386_v19 }
 0x7d5   :  { %v1394_v20 = vsel %vm1393_vm13, %v1391_v27, %v1384_v28 }
 0x7d6   :  { %3771 = vmatprep.mubr.msk.f32.mxu0 %vm223_vm2, %v1394_v20 }
 0x7d7   :  { %3772 = vmatmul.mubr.msk.f32.vlgmr.msra.gmra.mrb[4].mxu0 %vm223_vm2, %v1395_v39 }
 0x8aa   :  { %v3773_v61 = vpop.f32.mrb[4].mxu0 }
 0x8ab   :  { %v5002_v38 = vadd.f32 %v3773_v61, %v4666_v23  ;;  %v1480_v21 = vpop.f32.mrb[5].mxu0  ;;  %v3481_v23 = vld [vmem:[%s5549_s2 + $0x1] ss:$0 sm:$0xff] }
 0x8ac   :  { %v5005_v58 = vadd.f32 %v1480_v21, %v4668_v25  ;;  %v5019_v25 = vld [vmem:[%s5548_s1 + $0x18] sm:$0xff] }
 0x8ad   :  { %v1492_v57 = vmul.f32 %v5002_v38, %v5002_v38  ;;  %v4005_v8 = vpack.c.bf16 %v5024_v40, %v5019_v25  ;;  %v4189_v56 = vpack.i.bf16 %v5024_v40, %v5019_v25 }
 0x8ae   :  { %v1491_v55 = vmul.f32 %v5005_v58, %v5005_v58 }
 0x8af   :  { %v1496_v31 = vsel %vm223_vm2, %v1492_v57, 0.0  ;;  %4006 = vmatprep.subr.bf16.mxu1 %v4005_v8 }
 0x8b0   :  { %1497 = vadd.xlane.f32.xlu1 %v1496_v31  ;;  %v1493_v63 = vsel %vm223_vm2, %v1491_v55, 0.0  ;;  %4008 = vmatpush1.bf16.msra.mxu1 %v4007_v59 }
 0x8b1   :  { %1494 = vadd.xlane.f32.xlu0 %v1493_v63  ;;  %4010 = vmatprep.subr.bf16.mxu1 %v4009_v47 }
 0x8b4   :  { %4012 = vmatpush1.bf16.msra.mxu1 %v4011_v62 }
 0x8c1   :  { %4190 = vrot.lane.b32.xlu1 %v4189_v56, %s4451_s18 }
 0x8c5   :  { %4200 = vrot.lane.b32.xlu1 %v4199_v11, %s4451_s18 }
 0x8c7   :  { %1512 = vrot.lane.b32.xlu0 %v3481_v23, %s4439_s17 }
 0x8c9   :  { %4210 = vrot.lane.b32.xlu1 %v4209_v10, %s4451_s18 }
 0x8cb   :  { %4195 = vrot.lane.b32.xlu0 %v4194_v44, %s4451_s18 }
 0x8cf   :  { %4205 = vrot.lane.b32.xlu0 %v4204_v22, %s4451_s18 }
 0x8d3   :  { %4215 = vrot.lane.b32.xlu0 %v4214_v16, %s4451_s18 }
 0x93d   :  { %v1498_v18 = vpop.xlane.xlu1 %1497 }
 0x93e   :  { %v1500_v17 = vmul.f32 0.03125, %v1498_v18  ;;  %v1495_v19 = vpop.xlane.xlu0 %1494 }
 0x93f   :  { %v1499_v26 = vmul.f32 0.03125, %v1495_v19  ;;  %v5102_v19 = vld [vmem:[%s5548_s1 + $0x20] sm:$0xff] }
 0x940   :  { %v1502_v27 = vadd.f32 1e-05, %v1500_v17  ;;  %v5097_v17 = vld [vmem:[%s5548_s1 + $0x58] sm:$0xff] }
 0x941   :  { %v1501_v28 = vadd.f32 1e-05, %v1499_v26  ;;  %v4191_v31 = vpop.permute.xlu1 %4190 }
 0x942   :  { %4335 = vrsqrt.f32 %v1502_v27  ;;  %v1513_v39 = vpop.permute.xlu0 %1512  ;;  %v4193_v23 = vunpack.i.h.bf16 %v4191_v31  ;;  %v4192_v41 = vunpack.i.l.bf16 %v4191_v31 }
 0x943   :  { %4337 = vrsqrt.f32 %v1501_v28  ;;  %v4224_v28 = vpack.i.bf16 %v5097_v17, %v5024_v40 }
 0x944   :  { %v4013_v59 = vpack.c.bf16 %v4193_v23, %v4192_v41 }
 0x945   :  { %v4201_v42 = vpop.permute.xlu1 %4200 }
 0x946   :  { %v4196_v63 = vpop.permute.xlu0 %4195  ;;  %4014 = vmatprep.subr.bf16.mxu0 %v4013_v59  ;;  %v4203_v62 = vunpack.i.h.bf16 %v4201_v42  ;;  %v4202_v56 = vunpack.i.l.bf16 %v4201_v42 }
 0x947   :  { %v4198_v8 = vunpack.i.h.bf16 %v4196_v63  ;;  %v4197_v43 = vunpack.i.l.bf16 %v4196_v63  ;;  %4016 = vmatpush3.bf16.msra.mxu0 %v4013_v59 }
 0x948   :  { %v4021_v7 = vpack.c.bf16 %v4203_v62, %v4202_v56 }
 0x949   :  { %v4017_v47 = vpack.c.bf16 %v4198_v8, %v4197_v43  ;;  %v4211_v48 = vpop.permute.xlu1 %4210 }
 0x94a   :  { %v4206_v49 = vpop.permute.xlu0 %4205  ;;  %v4213_v52 = vunpack.i.h.bf16 %v4211_v48  ;;  %v4212_v11 = vunpack.i.l.bf16 %v4211_v48 }
 0x94b   :  { %4018 = vmatprep.subr.bf16.mxu0 %v4017_v47  ;;  %v4208_v44 = vunpack.i.h.bf16 %v4206_v49  ;;  %v4207_v3 = vunpack.i.l.bf16 %v4206_v49 }
 0x94c   :  { %v4336_v29 = vpop.eup %4335  ;;  %4020 = vmatpush3.bf16.msra.mxu0 %v4017_v47  ;;  %v4029_v13 = vpack.c.bf16 %v4213_v52, %v4212_v11 }
 0x94d   :  { %v4338_v20 = vpop.eup %4337  ;;  %v1506_v21 = vmul.f32 %v4336_v29, %v5002_v38  ;;  %4022 = vmatprep.subr.bf16.mxu0 %v4021_v7  ;;  %v4025_v22 = vpack.c.bf16 %v4208_v44, %v4207_v3  ;;  %v4219_v29 = vpack.i.bf16 %v5102_v19, %v5019_v25 }
 0x94e   :  { %v1505_v61 = vmul.f32 %v4338_v20, %v5005_v58  ;;  %v4216_v14 = vpop.permute.xlu0 %4215  ;;  %v5113_v20 = vld [vmem:[%s5548_s1 + $0x90] sm:$0xff] }
 0x94f   :  { %v1516_v55 = vmul.f32 %v1513_v39, %v1506_v21  ;;  %v4218_v5 = vunpack.i.h.bf16 %v4216_v14  ;;  %v4217_v15 = vunpack.i.l.bf16 %v4216_v14 }
 0x950   :  { %v1515_v57 = vmul.f32 %v1513_v39, %v1505_v61  ;;  %4024 = vmatpush3.bf16.msra.mxu0 %v4021_v7  ;;  %v4229_v39 = vpack.i.bf16 %v5113_v20, %v5037_v45 }
 0x951   :  { %4026 = vmatprep.subr.bf16.mxu0 %v4025_v22  ;;  %v4033_v10 = vpack.c.bf16 %v4218_v5, %v4217_v15 }
 0x952   :  { %3482 = vmatmul.mubr.msk.f32.vlgmr.msra.gmra.mrb[16].mxu1 %vm223_vm2, %v1515_v57 }
 0x953   :  { %1593 = vmatprep.mubr.f32.mxu1 %v4438_v24 }
 0x954   :  { %4028 = vmatpush3.bf16.msra.mxu0 %v4025_v22 }
 0x955   :  { %4030 = vmatprep.subr.bf16.mxu0 %v4029_v13 }
 0x956   :  { %3483 = vmatmul.mubr.msk.f32.gmra.mrb[18].mxu1 %vm223_vm2, %v1516_v55 }
 0x958   :  { %4032 = vmatpush3.bf16.msra.mxu0 %v4029_v13 }
 0x959   :  { %4034 = vmatprep.subr.bf16.mxu0 %v4033_v10 }
 0x95c   :  { %4036 = vmatpush3.bf16.msra.mxu0 %v4033_v10 }
 0xa25   :  { %v1589_v16 = vpop.f32.mrb[16].mxu1 }
 0xa26   :  { %1616 = vrot.lane.b32.xlu1 %v1589_v16, %s4445_s28  ;;  %v1591_v18 = vpop.f32.mrb[17].mxu1  ;;  %v1600_v40 = vsub.f32 0.0, %v1589_v16 }
 0xa27   :  { %1618 = vrot.lane.b32.xlu0 %v1591_v18, %s4445_s28 }
 0xa28   :  { %v1602_v61 = vmul.f32 1.442695, %v1600_v40 }
 0xa29   :  { %v1595_v26 = vpop.f32.mrb[18].mxu1 }
 0xa2a   :  { %1620 = vrot.lane.b32.xlu1 %v1595_v26, %s4445_s28  ;;  %v1597_v27 = vpop.f32.mrb[19].mxu1  ;;  %v1601_v21 = vsub.f32 0.0, %v1595_v26  ;;  %4339 = vpow2.f32 %v1602_v61 }
 0xa2b   :  { %1622 = vrot.lane.b32.xlu0 %v1597_v27, %s4445_s28 }
 0xa2c   :  { %v1604_v57 = vmul.f32 1.442695, %v1601_v21 }
 0xa2e   :  { %4225 = vrot.lane.b32.xlu1 %v4224_v28, %s4445_s28  ;;  %4341 = vpow2.f32 %v1604_v57 }
 0xa2f   :  { %4220 = vrot.lane.b32.xlu0 %v4219_v29, %s4445_s28 }
 0xa32   :  { %4230 = vrot.lane.b32.xlu1 %v4229_v39, %s4445_s28 }
 0xa34   :  { %v4340_v25 = vpop.eup %4339 }
 0xa35   :  { %v1606_v55 = vadd.f32 1.0, %v4340_v25 }
 0xa37   :  { %4343 = vrcp.f32 %v1606_v55 }
 0xa38   :  { %v4342_v31 = vpop.eup %4341 }
 0xa39   :  { %v1607_v63 = vadd.f32 1.0, %v4342_v31 }
 0xa3b   :  { %4345 = vrcp.f32 %v1607_v63 }
 0xa41   :  { %v4344_v23 = vpop.eup %4343 }
 0xa42   :  { %v1609_v8 = vmul.f32 %v4344_v23, %v1589_v16 }
 0xa45   :  { %v4346_v43 = vpop.eup %4345 }
 0xa46   :  { %v1611_v49 = vmul.f32 %v4346_v43, %v1595_v26 }
 0xa98   :  { %v1617_v41 = vpop.permute.xlu1 %1616 }
 0xa99   :  { %v1619_v45 = vpop.permute.xlu0 %1618 }
 0xa9a   :  { %v1624_v59 = vsel %vm223_vm2, %v1617_v41, %v1619_v45 }
 0xa9b   :  { %v1628_v47 = vmul.f32 %v1624_v59, %v1609_v8 }
 0xa9c   :  { %v1621_v42 = vpop.permute.xlu1 %1620 }
 0xa9d   :  { %3798 = vmatprep.mubr.msk.f32.mxu0 %vm1678_vm14, %v1628_v47  ;;  %v1623_v62 = vpop.permute.xlu0 %1622 }
 0xa9e   :  { %v1625_v56 = vsel %vm223_vm2, %v1621_v42, %v1623_v62 }
 0xa9f   :  { %v1629_v44 = vmul.f32 %v1625_v56, %v1611_v49 }
 0xaa0   :  { %v4226_v3 = vpop.permute.xlu1 %4225 }
 0xaa1   :  { %3799 = vmatmul.mubr.msk.f32.vlgmr.msra.gmra.mrb[6].mxu0 %vm1678_vm14, %v1629_v44  ;;  %v4221_v7 = vpop.permute.xlu0 %4220  ;;  %v4228_v48 = vunpack.i.h.bf16 %v4226_v3  ;;  %v4227_v52 = vunpack.i.l.bf16 %v4226_v3 }
 0xaa2   :  { %v4223_v11 = vunpack.i.h.bf16 %v4221_v7  ;;  %v4222_v22 = vunpack.i.l.bf16 %v4221_v7 }
 0xaa3   :  { %v1839_v14 = vsel %vm223_vm2, %v4227_v52, %v4228_v48 }
 0xaa4   :  { %v1838_v13 = vsel %vm223_vm2, %v4222_v22, %v4223_v11  ;;  %v4231_v40 = vpop.permute.xlu1 %4230 }
 0xaa5   :  { %v4037_v5 = vpack.c.bf16 %v1839_v14, %v1838_v13  ;;  %v4233_v55 = vunpack.i.h.bf16 %v4231_v40  ;;  %v4232_v31 = vunpack.i.l.bf16 %v4231_v40 }
 0xaa7   :  { %4038 = vmatprep.subr.bf16.mxu1 %v4037_v5 }
 0xaa8   :  { %4040 = vmatpush3.bf16.msra.mxu1 %v4037_v5 }
 0xb74   :  { %v3800_v15 = vpop.f32.mrb[6].mxu0 }
 0xb75   :  { %v5127_v10 = vadd.f32 %v3800_v15, %v5002_v38  ;;  %v1751_v16 = vpop.f32.mrb[7].mxu0  ;;  %v5141_v38 = vld [vmem:[%s5548_s1 + $0xc8] sm:$0xff] }
 0xb76   :  { %v5130_v18 = vadd.f32 %v1751_v16, %v5005_v58  ;;  %v3486_v58 = vld [vmem:[%s5549_s2 + $0x2] ss:$0 sm:$0xff]  ;;  %v4234_v39 = vpack.i.bf16 %v5141_v38, %v5042_v46  ;;  %v1840_v46 = vsel %vm223_vm2, %v4232_v31, %v4233_v55 }
 0xb77   :  { %v1789_v26 = vmul.f32 %v5127_v10, %v5127_v10 }
 0xb78   :  { %v1788_v27 = vmul.f32 %v5130_v18, %v5130_v18 }
 0xb79   :  { %v1793_v28 = vsel %vm223_vm2, %v1789_v26, 0.0 }
 0xb7a   :  { %1794 = vadd.xlane.f32.xlu0 %v1793_v28  ;;  %v1790_v29 = vsel %vm223_vm2, %v1788_v27, 0.0 }
 0xb7b   :  { %1791 = vadd.xlane.f32.xlu1 %v1790_v29 }
 0xb8c   :  { %1809 = vrot.lane.b32.xlu1 %v3486_v58, %s4439_s17 }
 0xb90   :  { %4235 = vrot.lane.b32.xlu0 %v4234_v39, %s4445_s28 }
 0xc07   :  { %v1795_v61 = vpop.xlane.xlu0 %1794 }
 0xc08   :  { %v1797_v21 = vmul.f32 0.03125, %v1795_v61  ;;  %v1792_v57 = vpop.xlane.xlu1 %1791 }
 0xc09   :  { %v1796_v25 = vmul.f32 0.03125, %v1792_v57 }
 0xc0a   :  { %v1799_v63 = vadd.f32 1e-05, %v1797_v21 }
 0xc0b   :  { %v1798_v23 = vadd.f32 1e-05, %v1796_v25  ;;  %v4236_v41 = vpop.permute.xlu0 %4235 }
 0xc0c   :  { %4347 = vrsqrt.f32 %v1799_v63  ;;  %v4238_v8 = vunpack.i.h.bf16 %v4236_v41  ;;  %v4237_v45 = vunpack.i.l.bf16 %v4236_v41  ;;  %v1810_v62 = vpop.permute.xlu1 %1809 }
 0xc0d   :  { %4349 = vrsqrt.f32 %v1798_v23 }
 0xc0e   :  { %v1841_v43 = vsel %vm223_vm2, %v4237_v45, %v4238_v8 }
 0xc0f   :  { %v4041_v59 = vpack.c.bf16 %v1841_v43, %v1840_v46 }
 0xc11   :  { %4042 = vmatprep.subr.bf16.mxu1 %v4041_v59 }
 0xc12   :  { %4044 = vmatpush3.bf16.msra.mxu1 %v4041_v59 }
 0xc16   :  { %v4348_v47 = vpop.eup %4347 }
 0xc17   :  { %v4350_v42 = vpop.eup %4349  ;;  %v1803_v49 = vmul.f32 %v4348_v47, %v5127_v10 }
 0xc18   :  { %v1802_v56 = vmul.f32 %v4350_v42, %v5130_v18 }
 0xc19   :  { %v1813_v3 = vmul.f32 %v1810_v62, %v1803_v49 }
 0xc1a   :  { %v1812_v44 = vmul.f32 %v1810_v62, %v1802_v56 }
 0xc1c   :  { %3809 = vmatprep.mubr.msk.f32.mxu1 %vm223_vm2, %v1812_v44 }
 0xc1d   :  { %3810 = vmatmul.mubr.msk.f32.vlgmr.msra.gmra.mrb[20].mxu1 %vm223_vm2, %v1813_v3 }
 0xcf0   :  { %v5156_v7 = vpop.f32.mrb[20].mxu1 }
 0xcf1   :  { %1931 = vrot.lane.b32.xlu1 %v5156_v7, %s4440_s21  ;;  %v5160_v48 = vpop.f32.mrb[21].mxu1 }
 0xcf2   :  { %1929 = vrot.lane.b32.xlu0 %v5160_v48, %s4440_s21 }
 0xcf5   :  { %1937 = vrot.lane.b32.xlu1 %v5156_v7, %s4443_s24 }
 0xcf6   :  { %1935 = vrot.lane.b32.xlu0 %v5160_v48, %s4443_s24 }
 0xcf9   :  { %1943 = vrot.lane.b32.xlu1 %v5156_v7, %s4444_s25 }
 0xcfa   :  { %1941 = vrot.lane.b32.xlu0 %v5160_v48, %s4444_s25 }
 0xcfd   :  { %2029 = vrot.lane.b32.xlu1 %v5156_v7, %s4441_s23 }
 0xcfe   :  { %2027 = vrot.lane.b32.xlu0 %v5160_v48, %s4441_s23 }
 0xd01   :  { %2053 = vrot.lane.b32.xlu1 %v5156_v7, %s4442_s22 }
 0xd02   :  { %2051 = vrot.lane.b32.xlu0 %v5160_v48, %s4442_s22 }
 0xd63   :  { %v5180_v52 = vpop.permute.xlu1 %1931 }
 0xd64   :  { %2033 = vrot.lane.b32.xlu1 %v5180_v52, %s4441_s23  ;;  %v5184_v11 = vpop.permute.xlu0 %1929 }
 0xd65   :  { %2031 = vrot.lane.b32.xlu0 %v5184_v11, %s4441_s23 }
 0xd67   :  { %v5188_v22 = vpop.permute.xlu1 %1937 }
 0xd68   :  { %2057 = vrot.lane.b32.xlu1 %v5180_v52, %s4442_s22  ;;  %v5192_v13 = vpop.permute.xlu0 %1935 }
 0xd69   :  { %2055 = vrot.lane.b32.xlu0 %v5184_v11, %s4442_s22 }
 0xd6b   :  { %v5196_v14 = vpop.permute.xlu1 %1943 }
 0xd6c   :  { %2037 = vrot.lane.b32.xlu1 %v5188_v22, %s4441_s23  ;;  %v5200_v5 = vpop.permute.xlu0 %1941 }
 0xd6d   :  { %2035 = vrot.lane.b32.xlu0 %v5192_v13, %s4441_s23 }
 0xd6f   :  { %v2030_v15 = vpop.permute.xlu1 %2029 }
 0xd70   :  { %2061 = vrot.lane.b32.xlu1 %v5188_v22, %s4442_s22  ;;  %v2028_v16 = vpop.permute.xlu0 %2027 }
 0xd71   :  { %2059 = vrot.lane.b32.xlu0 %v5192_v13, %s4442_s22 }
 0xd73   :  { %v2054_v26 = vpop.permute.xlu1 %2053 }
 0xd74   :  { %2041 = vrot.lane.b32.xlu1 %v5196_v14, %s4441_s23  ;;  %v2052_v27 = vpop.permute.xlu0 %2051  ;;  %v2076_v28 = vsel %vm414_vm4, %v2030_v15, %v2054_v26  ;;  %v2084_v26 = vmul.f32 %v5156_v7, %v4808_v51 }
 0xd75   :  { %2039 = vrot.lane.b32.xlu0 %v5200_v5, %s4441_s23  ;;  %v2075_v29 = vsel %vm414_vm4, %v2028_v16, %v2052_v27  ;;  %v2092_v58 = vmul.f32 %v2076_v28, %v4783_v12  ;;  %v2083_v28 = vmul.f32 %v5160_v48, %v4806_v50 }
 0xd76   :  { %v2091_v39 = vmul.f32 %v2075_v29, %v4756_v60 }
 0xd78   :  { %2065 = vrot.lane.b32.xlu1 %v5196_v14, %s4442_s22 }
 0xd79   :  { %2063 = vrot.lane.b32.xlu0 %v5200_v5, %s4442_s22 }
 0xd7c   :  { %2109 = vrot.lane.b32.xlu1 %v2092_v58, %s4445_s28 }
 0xd7d   :  { %2107 = vrot.lane.b32.xlu0 %v2091_v39, %s4445_s28 }
 0xdd6   :  { %v2034_v40 = vpop.permute.xlu1 %2033 }
 0xdd7   :  { %v2032_v61 = vpop.permute.xlu0 %2031 }
 0xdda   :  { %v2058_v21 = vpop.permute.xlu1 %2057 }
 0xddb   :  { %v2078_v57 = vsel %vm414_vm4, %v2034_v40, %v2058_v21  ;;  %v2056_v25 = vpop.permute.xlu0 %2055 }
 0xddc   :  { %v2094_v55 = vmul.f32 %v2078_v57, %v4783_v12  ;;  %v2077_v31 = vsel %vm414_vm4, %v2032_v61, %v2056_v25  ;;  %v2086_v61 = vmul.f32 %v5180_v52, %v4808_v51  ;;  %v2085_v57 = vmul.f32 %v5184_v11, %v4806_v50 }
 0xddd   :  { %v2093_v63 = vmul.f32 %v2077_v31, %v4756_v60 }
 0xdde   :  { %2113 = vrot.lane.b32.xlu1 %v2094_v55, %s4445_s28  ;;  %v2038_v23 = vpop.permute.xlu1 %2037 }
 0xddf   :  { %2111 = vrot.lane.b32.xlu0 %v2093_v63, %s4445_s28  ;;  %v2036_v41 = vpop.permute.xlu0 %2035 }
 0xde2   :  { %v2062_v8 = vpop.permute.xlu1 %2061 }
 0xde3   :  { %v2080_v45 = vsel %vm414_vm4, %v2038_v23, %v2062_v8  ;;  %v2060_v46 = vpop.permute.xlu0 %2059  ;;  %v2088_v23 = vmul.f32 %v5188_v22, %v4808_v51  ;;  %v2087_v8 = vmul.f32 %v5192_v13, %v4806_v50 }
 0xde4   :  { %v2096_v43 = vmul.f32 %v2080_v45, %v4783_v12  ;;  %v2079_v59 = vsel %vm414_vm4, %v2036_v41, %v2060_v46 }
 0xde5   :  { %v2095_v47 = vmul.f32 %v2079_v59, %v4756_v60 }
 0xde6   :  { %2117 = vrot.lane.b32.xlu1 %v2096_v43, %s4445_s28  ;;  %v2042_v42 = vpop.permute.xlu1 %2041 }
 0xde7   :  { %2115 = vrot.lane.b32.xlu0 %v2095_v47, %s4445_s28  ;;  %v2040_v49 = vpop.permute.xlu0 %2039  ;;  %v2090_v47 = vmul.f32 %v5196_v14, %v4808_v51 }
 0xdea   :  { %v2066_v62 = vpop.permute.xlu1 %2065 }
 0xdeb   :  { %v2082_v56 = vsel %vm414_vm4, %v2042_v42, %v2066_v62  ;;  %v2064_v44 = vpop.permute.xlu0 %2063 }
 0xdec   :  { %v2098_v3 = vmul.f32 %v2082_v56, %v4783_v12  ;;  %v2081_v15 = vsel %vm414_vm4, %v2040_v49, %v2064_v44  ;;  %v2089_v49 = vmul.f32 %v5200_v5, %v4806_v50  ;;  %v5292_v50 = vld [vmem:[%s5549_s2] sm:$0xff] }
 0xded   :  { %v2097_v16 = vmul.f32 %v2081_v15, %v4756_v60  ;;  %v2003_v51 = vmul.f32 %v5292_v50, %v5160_v48 }
 0xdee   :  { %2121 = vrot.lane.b32.xlu1 %v2098_v3, %s4445_s28  ;;  %v2110_v27 = vpop.permute.xlu1 %2109 }
 0xdef   :  { %v2132_v29 = vadd.f32 %v2110_v27, %v2084_v26  ;;  %2119 = vrot.lane.b32.xlu0 %v2097_v16, %s4445_s28  ;;  %v2108_v58 = vpop.permute.xlu0 %2107 }
 0xdf0   :  { %v2131_v39 = vadd.f32 %v2108_v58, %v2083_v28 }
 0xdf2   :  { %v4239_v40 = vpack.i.bf16 %v2132_v29, %v2131_v39  ;;  %1947 = vrot.lane.b32.xlu1 %v5160_v48, %s4446_s29 }
 0xdf3   :  { %1971 = vrot.lane.b32.xlu0 %v5160_v48, %s4447_s30 }
 0xdf6   :  { %1949 = vrot.lane.b32.xlu1 %v5156_v7, %s4446_s29 }
 0xdf7   :  { %1973 = vrot.lane.b32.xlu0 %v5156_v7, %s4447_s30 }
 0xdfa   :  { %1975 = vrot.lane.b32.xlu1 %v5184_v11, %s4447_s30 }
 0xdfb   :  { %1951 = vrot.lane.b32.xlu0 %v5184_v11, %s4446_s29 }
 0xdfe   :  { %1977 = vrot.lane.b32.xlu1 %v5180_v52, %s4447_s30 }
 0xdff   :  { %4240 = vrot.lane.b32.xlu0 %v4239_v40, %s4439_s17 }
 0xe02   :  { %1979 = vrot.lane.b32.xlu1 %v5192_v13, %s4447_s30 }
 0xe03   :  { %1953 = vrot.lane.b32.xlu0 %v5180_v52, %s4446_s29 }
 0xe07   :  { %1955 = vrot.lane.b32.xlu0 %v5192_v13, %s4446_s29 }
 0xe0b   :  { %1957 = vrot.lane.b32.xlu0 %v5188_v22, %s4446_s29 }
 0xe50   :  { %v2114_v21 = vpop.permute.xlu1 %2113 }
 0xe51   :  { %v2134_v25 = vadd.f32 %v2114_v21, %v2086_v61  ;;  %v2112_v55 = vpop.permute.xlu0 %2111 }
 0xe52   :  { %v2133_v31 = vadd.f32 %v2112_v55, %v2085_v57 }
 0xe54   :  { %v4244_v63 = vpack.i.bf16 %v2134_v25, %v2133_v31 }
 0xe56   :  { %4245 = vrot.lane.b32.xlu1 %v4244_v63, %s4439_s17 }
 0xe58   :  { %v2118_v41 = vpop.permute.xlu1 %2117 }
 0xe59   :  { %v2136_v45 = vadd.f32 %v2118_v41, %v2088_v23  ;;  %v2116_v46 = vpop.permute.xlu0 %2115 }
 0xe5a   :  { %v2135_v43 = vadd.f32 %v2116_v46, %v2087_v8  ;;  %1959 = vrot.lane.b32.xlu1 %v5200_v5, %s4446_s29 }
 0xe5c   :  { %v4249_v59 = vpack.i.bf16 %v2136_v45, %v2135_v43  ;;  %v4398_v43 = vld [vmem:[%s5549_s2 + $0x8] sm:$0xff] }
 0xe5e   :  { %4250 = vrot.lane.b32.xlu0 %v4249_v59, %s4439_s17  ;;  %v2004_v59 = vmul.f32 %v4398_v43, %v5156_v7 }
 0xe60   :  { %v2122_v42 = vpop.permute.xlu1 %2121 }
 0xe61   :  { %v2138_v62 = vadd.f32 %v2122_v42, %v2090_v47  ;;  %v2120_v56 = vpop.permute.xlu0 %2119  ;;  %v2005_v42 = vmul.f32 %v5292_v50, %v5184_v11 }
 0xe62   :  { %v2137_v44 = vadd.f32 %v2120_v56, %v2089_v49  ;;  %1981 = vrot.lane.b32.xlu0 %v5188_v22, %s4447_s30  ;;  %v2007_v49 = vmul.f32 %v5292_v50, %v5192_v13 }
 0xe64   :  { %v4254_v3 = vpack.i.bf16 %v2138_v62, %v2137_v44  ;;  %v1948_v15 = vpop.permute.xlu1 %1947 }
 0xe65   :  { %v1972_v16 = vpop.permute.xlu0 %1971 }
 0xe66   :  { %v1995_v26 = vsel %vm414_vm4, %v1948_v15, %v1972_v16  ;;  %4255 = vrot.lane.b32.xlu1 %v4254_v3, %s4439_s17  ;;  %1961 = vrot.lane.b32.xlu0 %v5196_v14, %s4446_s29 }
 0xe67   :  { %v2011_v27 = vmul.f32 %v1995_v26, %v4756_v60 }
 0xe68   :  { %v1950_v28 = vpop.permute.xlu1 %1949 }
 0xe69   :  { %v2019_v29 = vadd.f32 %v2011_v27, %v2003_v51  ;;  %v1974_v58 = vpop.permute.xlu0 %1973  ;;  %v2006_v27 = vmul.f32 %v4398_v43, %v5180_v52 }
 0xe6a   :  { %1983 = vrot.lane.b32.xlu1 %v5200_v5, %s4447_s30  ;;  %v1996_v55 = vsel %vm414_vm4, %v1950_v28, %v1974_v58 }
 0xe6b   :  { %3816 = vmatprep.mubr.msk.f32.mxu1 %vm585_vm5, %v2019_v29  ;;  %v2012_v41 = vmul.f32 %v1996_v55, %v4783_v12 }
 0xe6c   :  { %v1976_v39 = vpop.permute.xlu1 %1975 }
 0xe6d   :  { %v1952_v40 = vpop.permute.xlu0 %1951  ;;  %v2020_v56 = vadd.f32 %v2012_v41, %v2004_v59 }
 0xe6e   :  { %1985 = vrot.lane.b32.xlu1 %v5196_v14, %s4447_s30  ;;  %v1997_v63 = vsel %vm414_vm4, %v1952_v40, %v1976_v39 }
 0xe6f   :  { %v2013_v8 = vmul.f32 %v1997_v63, %v4756_v60 }
 0xe70   :  { %v1978_v25 = vpop.permute.xlu1 %1977 }
 0xe71   :  { %v4241_v61 = vpop.permute.xlu0 %4240  ;;  %v2021_v44 = vadd.f32 %v2013_v8, %v2005_v42 }
 0xe72   :  { %v4243_v21 = vunpack.i.h.bf16 %v4241_v61  ;;  %v4242_v57 = vunpack.i.l.bf16 %v4241_v61 }
 0xe74   :  { %v4045_v48 = vpack.c.bf16 %v4243_v21, %v4242_v57  ;;  %v1980_v45 = vpop.permute.xlu1 %1979 }
 0xe75   :  { %v1954_v31 = vpop.permute.xlu0 %1953 }
 0xe76   :  { %v1998_v23 = vsel %vm414_vm4, %v1954_v31, %v1978_v25  ;;  %4047 = vmatprep.subr.msk.bf16.mxu1 %vm4869_vm7, %v4045_v48  ;;  %v2008_v25 = vmul.f32 %v4398_v43, %v5188_v22 }
 0xe77   :  { %4050 = vmatpush3.bf16.xpose.msk.msra.mxu1 %vm4869_vm7, %v4045_v48  ;;  %v2014_v11 = vmul.f32 %v1998_v23, %v4783_v12 }
 0xe79   :  { %v1956_v46 = vpop.permute.xlu0 %1955  ;;  %v2022_v58 = vadd.f32 %v2014_v11, %v2006_v27 }
 0xe7a   :  { %v1999_v47 = vsel %vm414_vm4, %v1956_v46, %v1980_v45  ;;  %v2009_v45 = vmul.f32 %v5292_v50, %v5200_v5 }
 0xe7b   :  { %v2015_v62 = vmul.f32 %v1999_v47, %v4756_v60 }
 0xe7d   :  { %v2023_v3 = vadd.f32 %v2015_v62, %v2007_v49  ;;  %v1958_v51 = vpop.permute.xlu0 %1957  ;;  %v2010_v49 = vmul.f32 %v4398_v43, %v5196_v14 }
 0xe7e   :  { %3817 = vmatmul.mubr.msk.f32.vlgmr.msra.gmra.mrb[22].mxu1 %vm585_vm5, %v2020_v56 }
 0xe7f   :  { %3823 = vmatprep.mubr.msk.f32.mxu1 %vm585_vm5, %v2021_v44  ;;  %3830 = vmatprep.mubr.msk.f32.mxu0 %vm585_vm5, %v2023_v3 }
 0xec8   :  { %v4246_v7 = vpop.permute.xlu1 %4245 }
 0xec9   :  { %v4248_v15 = vunpack.i.h.bf16 %v4246_v7  ;;  %v4247_v16 = vunpack.i.l.bf16 %v4246_v7 }
 0xecb   :  { %v4051_v26 = vpack.c.bf16 %v4248_v15, %v4247_v16 }
 0xecc   :  { %v1960_v40 = vpop.permute.xlu1 %1959 }
 0xecd   :  { %4053 = vmatprep.subr.msk.bf16.mxu1 %vm4869_vm7, %v4051_v26 }
 0xece   :  { %4056 = vmatpush3.bf16.xpose.msk.msra.mxu1 %vm4869_vm7, %v4051_v26 }
 0xed0   :  { %v4251_v13 = vpop.permute.xlu0 %4250 }
 0xed1   :  { %v4253_v28 = vunpack.i.h.bf16 %v4251_v13  ;;  %v4252_v29 = vunpack.i.l.bf16 %v4251_v13 }
 0xed3   :  { %v5330_v39 = vpack.c.bf16 %v4253_v28, %v4252_v29 }
 0xed4   :  { %v1982_v61 = vpop.permute.xlu0 %1981 }
 0xed5   :  { %v2000_v21 = vsel %vm414_vm4, %v1958_v51, %v1982_v61  ;;  %3824 = vmatmul.mubr.msk.f32.vlgmr.msra.gmra.mrb[24].mxu1 %vm585_vm5, %v2022_v58  ;;  %4059 = vmatprep.subr.msk.bf16.mxu0 %vm4869_vm7, %v5330_v39 }
 0xed6   :  { %4062 = vmatpush3.bf16.xpose.msk.msra.mxu0 %vm4869_vm7, %v5330_v39  ;;  %v2016_v52 = vmul.f32 %v2000_v21, %v4783_v12 }
 0xed7   :  { %4070 = vmatprep.subr.bf16.mxu0 %v4045_v48 }
 0xed8   :  { %v4256_v57 = vpop.permute.xlu1 %4255  ;;  %v2024_v63 = vadd.f32 %v2016_v52, %v2008_v25  ;;  %v1962_v22 = vpop.permute.xlu0 %1961 }
 0xed9   :  { %v4258_v55 = vunpack.i.h.bf16 %v4256_v57  ;;  %v4257_v31 = vunpack.i.l.bf16 %v4256_v57 }
 0xedb   :  { %v5342_v23 = vpack.c.bf16 %v4258_v55, %v4257_v31 }
 0xedc   :  { %v1984_v41 = vpop.permute.xlu1 %1983 }
 0xedd   :  { %v2001_v8 = vsel %vm414_vm4, %v1960_v40, %v1984_v41  ;;  %3831 = vmatmul.mubr.msk.f32.vlgmr.msra.gmra.mrb[8].mxu0 %vm585_vm5, %v2024_v63  ;;  %4065 = vmatprep.subr.msk.bf16.mxu1 %vm4869_vm7, %v5342_v23 }
 0xede   :  { %v2017_v46 = vmul.f32 %v2001_v8, %v4756_v60  ;;  %4068 = vmatpush3.bf16.xpose.msk.msra.mxu1 %vm4869_vm7, %v5342_v23  ;;  %4072 = vmatpush3.bf16.msra.mxu0 %v4045_v48 }
 0xedf   :  { %4074 = vmatprep.subr.bf16.mxu1 %v4051_v26  ;;  %4078 = vmatprep.subr.bf16.mxu0 %v5330_v39 }
 0xee0   :  { %v2025_v59 = vadd.f32 %v2017_v46, %v2009_v45  ;;  %v1986_v47 = vpop.permute.xlu1 %1985 }
 0xee1   :  { %v2002_v42 = vsel %vm414_vm4, %v1962_v22, %v1986_v47 }
 0xee2   :  { %v2018_v62 = vmul.f32 %v2002_v42, %v4783_v12  ;;  %3837 = vmatprep.mubr.msk.f32.mxu1 %vm585_vm5, %v2025_v59 }
 0xee4   :  { %v2026_v60 = vadd.f32 %v2018_v62, %v2010_v49 }
 0xee6   :  { %3838 = vmatmul.mubr.msk.f32.vlgmr.msra.gmra.mrb[26].mxu1 %vm585_vm5, %v2026_v60 }
 0xee7   :  { %4076 = vmatpush3.bf16.msra.mxu1 %v4051_v26 }
 0xee8   :  { %4082 = vmatprep.subr.bf16.mxu1 %v5342_v23 }
 0xf51   :  { %v3818_v54 = vpop.f32.mrb[22].mxu1 }
 0xf52   :  { %v2227_v5 = vadd.f32 %v3818_v54, %v4943_v34  ;;  %v2221_v50 = vpop.f32.mrb[23].mxu1 }
 0xf53   :  { %v2222_v48 = vadd.f32 %v2221_v50, %v4945_v53 }
 0xf54   :  { %v2506_v56 = vsel %vm944_vm9, %v2227_v5, -inf }
 0xf55   :  { %2507 = vmax.xlane.f32.xlu1 %v2506_v56  ;;  %v2503_v14 = vsel %vm944_vm9, %v2222_v48, -inf }
 0xf56   :  { %2504 = vmax.xlane.f32.xlu0 %v2503_v14 }
 0xfa8   :  { %v3825_v12 = vpop.f32.mrb[24].mxu1 }
 0xfa9   :  { %v2318_v43 = vadd.f32 %v3825_v12, %v4943_v34  ;;  %v2312_v44 = vpop.f32.mrb[25].mxu1 }
 0xfaa   :  { %v2313_v3 = vadd.f32 %v2312_v44, %v4945_v53 }
 0xfab   :  { %v2512_v7 = vsel %vm944_vm9, %v2318_v43, -inf }
 0xfac   :  { %2513 = vmax.xlane.f32.xlu0 %v2512_v7  ;;  %v2509_v15 = vsel %vm944_vm9, %v2313_v3, -inf }
 0xfb0   :  { %v3832_v16 = vpop.f32.mrb[8].mxu0  ;;  %2510 = vmax.xlane.f32.xlu0 %v2509_v15 }
 0xfb1   :  { %v2409_v26 = vadd.f32 %v3832_v16, %v4943_v34  ;;  %v2403_v51 = vpop.f32.mrb[9].mxu0 }
 0xfb2   :  { %v2404_v11 = vadd.f32 %v2403_v51, %v4945_v53 }
 0xfb3   :  { %v2518_v13 = vsel %vm944_vm9, %v2409_v26, -inf }
 0xfb4   :  { %2519 = vmax.xlane.f32.xlu0 %v2518_v13  ;;  %v2515_v27 = vsel %vm944_vm9, %v2404_v11, -inf }
 0xfb5   :  { %2516 = vmax.xlane.f32.xlu1 %v2515_v27 }
 0xfb9   :  { %v3839_v28 = vpop.f32.mrb[26].mxu1 }
 0xfba   :  { %v2500_v29 = vadd.f32 %v3839_v28, %v4943_v34  ;;  %v2494_v58 = vpop.f32.mrb[27].mxu1 }
 0xfbb   :  { %v2495_v40 = vadd.f32 %v2494_v58, %v4945_v53 }
 0xfbc   :  { %v2524_v61 = vsel %vm944_vm9, %v2500_v29, -inf }
 0xfbd   :  { %2525 = vmax.xlane.f32.xlu0 %v2524_v61  ;;  %v2521_v21 = vsel %vm944_vm9, %v2495_v40, -inf }
 0xfbe   :  { %2522 = vmax.xlane.f32.xlu1 %v2521_v21 }
 0xfe2   :  { %v2508_v52 = vpop.xlane.xlu1 %2507 }
 0xfe3   :  { %v2528_v57 = vsub.f32 %v2227_v5, %v2508_v52  ;;  %v2505_v25 = vpop.xlane.xlu0 %2504 }
 0xfe4   :  { %v2527_v55 = vsub.f32 %v2222_v48, %v2505_v25 }
 0xfe5   :  { %v2537_v31 = vmul.f32 1.442695, %v2528_v57 }
 0xfe6   :  { %v2535_v63 = vmul.f32 1.442695, %v2527_v55 }
 0xfe7   :  { %4351 = vpow2.f32 %v2537_v31 }
 0xfe8   :  { %4353 = vpow2.f32 %v2535_v63 }
 0xff1   :  { %v4352_v41 = vpop.eup %4351 }
 0xff2   :  { %v4354_v8 = vpop.eup %4353  ;;  %v2554_v34 = vsel %vm944_vm9, %v4352_v41, 0.0 }
 0xff3   :  { %2555 = vadd.xlane.f32.xlu0 %v2554_v34  ;;  %v2551_v53 = vsel %vm944_vm9, %v4354_v8, 0.0 }
 0xff4   :  { %2552 = vadd.xlane.f32.xlu1 %v2551_v53  ;;  %v4259_v53 = vpack.i.bf16 %v5097_v17, %v5102_v19 }
0x1039   :  { %v2514_v45 = vpop.xlane.xlu0 %2513 }
0x103a   :  { %v2530_v46 = vsub.f32 %v2318_v43, %v2514_v45 }
0x103c   :  { %v2541_v22 = vmul.f32 1.442695, %v2530_v46 }
0x103d   :  { %v2511_v59 = vpop.xlane.xlu0 %2510 }
0x103e   :  { %4355 = vpow2.f32 %v2541_v22  ;;  %v2529_v47 = vsub.f32 %v2313_v3, %v2511_v59 }
0x1040   :  { %v2539_v42 = vmul.f32 1.442695, %v2529_v47 }
0x1041   :  { %v2520_v49 = vpop.xlane.xlu0 %2519 }
0x1042   :  { %4357 = vpow2.f32 %v2539_v42  ;;  %v2532_v62 = vsub.f32 %v2409_v26, %v2520_v49  ;;  %v2517_v60 = vpop.xlane.xlu1 %2516 }
0x1043   :  { %v2531_v54 = vsub.f32 %v2404_v11, %v2517_v60 }
0x1044   :  { %v2545_v5 = vmul.f32 1.442695, %v2532_v62 }
0x1045   :  { %v2543_v50 = vmul.f32 1.442695, %v2531_v54 }
0x1046   :  { %4359 = vpow2.f32 %v2545_v5 }
0x1047   :  { %4361 = vpow2.f32 %v2543_v50  ;;  %v4264_v50 = vpack.i.bf16 %v5141_v38, %v5113_v20 }
0x1048   :  { %v4356_v48 = vpop.eup %4355 }
0x1049   :  { %v2560_v56 = vsel %vm944_vm9, %v4356_v48, 0.0 }
0x104a   :  { %2561 = vadd.xlane.f32.xlu0 %v2560_v56  ;;  %v2526_v14 = vpop.xlane.xlu0 %2525 }
0x104b   :  { %v2534_v12 = vsub.f32 %v2500_v29, %v2526_v14  ;;  %v2523_v43 = vpop.xlane.xlu1 %2522 }
0x104c   :  { %v4358_v44 = vpop.eup %4357  ;;  %v2533_v7 = vsub.f32 %v2495_v40, %v2523_v43 }
0x104d   :  { %v2549_v3 = vmul.f32 1.442695, %v2534_v12  ;;  %v2557_v15 = vsel %vm944_vm9, %v4358_v44, 0.0 }
0x104e   :  { %v2547_v16 = vmul.f32 1.442695, %v2533_v7  ;;  %2558 = vadd.xlane.f32.xlu1 %v2557_v15 }
0x104f   :  { %4363 = vpow2.f32 %v2549_v3 }
0x1050   :  { %v4360_v26 = vpop.eup %4359  ;;  %4365 = vpow2.f32 %v2547_v16 }
0x1051   :  { %v4362_v51 = vpop.eup %4361  ;;  %v2566_v11 = vsel %vm944_vm9, %v4360_v26, 0.0 }
0x1052   :  { %2567 = vadd.xlane.f32.xlu0 %v2566_v11  ;;  %v2563_v13 = vsel %vm944_vm9, %v4362_v51, 0.0 }
0x1053   :  { %2564 = vadd.xlane.f32.xlu1 %v2563_v13  ;;  %v1771_v13 = vld [vmem:[%s5548_s1 + $0x60] sm:$0xff] }
0x1059   :  { %v4364_v27 = vpop.eup %4363 }
0x105a   :  { %v4366_v28 = vpop.eup %4365  ;;  %v2572_v29 = vsel %vm944_vm9, %v4364_v27, 0.0 }
0x105b   :  { %2573 = vadd.xlane.f32.xlu0 %v2572_v29  ;;  %v2569_v58 = vsel %vm944_vm9, %v4366_v28, 0.0 }
0x105c   :  { %2570 = vadd.xlane.f32.xlu1 %v2569_v58  ;;  %v4274_v58 = vpack.i.bf16 %v1771_v13, %v5097_v17 }
0x106d   :  { %4260 = vrot.lane.b32.xlu1 %v4259_v53, %s4439_s17 }
0x1071   :  { %4265 = vrot.lane.b32.xlu0 %v4264_v50, %s4439_s17 }
0x1080   :  { %v2556_v40 = vpop.xlane.xlu0 %2555 }
0x1081   :  { %4367 = vrcp.f32 %v2556_v40  ;;  %v2553_v61 = vpop.xlane.xlu1 %2552 }
0x1082   :  { %4369 = vrcp.f32 %v2553_v61  ;;  %v1772_v61 = vld [vmem:[%s5548_s1 + $0x98] sm:$0xff] }
0x108b   :  { %v4368_v21 = vpop.eup %4367 }
0x108c   :  { %v4370_v52 = vpop.eup %4369  ;;  %v2578_v25 = vmul.f32 %v4368_v21, %v4352_v41  ;;  %v4279_v21 = vpack.i.bf16 %v1772_v61, %v5113_v20 }
0x108d   :  { %v2576_v57 = vmul.f32 %v4370_v52, %v4354_v8 }
0x108f   :  { %3844 = vmatprep.mubr.msk.f32.mxu0 %vm944_vm9, %v2576_v57 }
0x1090   :  { %3845 = vmatmul.mubr.msk.f32.vlgmr.msra.gmra.mrb[10].mxu0 %vm944_vm9, %v2578_v25 }
0x1091   :  { %4080 = vmatpush3.bf16.msra.mxu0 %v5330_v39 }
0x10d7   :  { %v2562_v55 = vpop.xlane.xlu0 %2561 }
0x10d8   :  { %4371 = vrcp.f32 %v2562_v55 }
0x10db   :  { %v2559_v31 = vpop.xlane.xlu1 %2558 }
0x10dc   :  { %4373 = vrcp.f32 %v2559_v31 }
0x10df   :  { %v2568_v63 = vpop.xlane.xlu0 %2567 }
0x10e0   :  { %4375 = vrcp.f32 %v2568_v63  ;;  %v2565_v34 = vpop.xlane.xlu1 %2564 }
0x10e1   :  { %4377 = vrcp.f32 %v2565_v34 }
0x10e2   :  { %v4372_v45 = vpop.eup %4371 }
0x10e3   :  { %v2582_v46 = vmul.f32 %v4372_v45, %v4356_v48 }
0x10e6   :  { %v4374_v8 = vpop.eup %4373 }
0x10e7   :  { %v2580_v41 = vmul.f32 %v4374_v8, %v4358_v44 }
0x10e8   :  { %v2574_v22 = vpop.xlane.xlu0 %2573 }
0x10e9   :  { %4379 = vrcp.f32 %v2574_v22  ;;  %3851 = vmatprep.mubr.msk.f32.mxu1 %vm944_vm9, %v2580_v41  ;;  %v2571_v39 = vpop.xlane.xlu1 %2570 }
0x10ea   :  { %v4376_v59 = vpop.eup %4375  ;;  %4381 = vrcp.f32 %v2571_v39  ;;  %3852 = vmatmul.mubr.msk.f32.vlgmr.msra.gmra.mrb[28].mxu1 %vm944_vm9, %v2582_v46 }
0x10eb   :  { %v4378_v47 = vpop.eup %4377  ;;  %4084 = vmatpush3.bf16.msra.mxu1 %v5342_v23  ;;  %v2586_v49 = vmul.f32 %v4376_v59, %v4360_v26 }
0x10ec   :  { %v2584_v42 = vmul.f32 %v4378_v47, %v4362_v51  ;;  %v4266_v44 = vpop.permute.xlu0 %4265 }
0x10ed   :  { %v4261_v23 = vpop.permute.xlu1 %4260  ;;  %v4268_v7 = vunpack.i.h.bf16 %v4266_v44  ;;  %v4267_v3 = vunpack.i.l.bf16 %v4266_v44 }
0x10ee   :  { %3858 = vmatprep.mubr.msk.f32.mxu0 %vm944_vm9, %v2584_v42  ;;  %v4263_v48 = vunpack.i.h.bf16 %v4261_v23  ;;  %v4262_v56 = vunpack.i.l.bf16 %v4261_v23 }
0x10ef   :  { %3859 = vmatmul.mubr.msk.f32.vlgmr.msra.gmra.mrb[12].mxu0 %vm944_vm9, %v2586_v49  ;;  %v4089_v15 = vpack.c.bf16 %v4268_v7, %v4267_v3 }
0x10f0   :  { %v4085_v14 = vpack.c.bf16 %v4263_v48, %v4262_v56 }
0x10f2   :  { %4086 = vmatprep.subr.bf16.mxu0 %v4085_v14 }
0x10f3   :  { %v4380_v62 = vpop.eup %4379  ;;  %4088 = vmatpush3.bf16.msra.mxu0 %v4085_v14 }
0x10f4   :  { %v4382_v60 = vpop.eup %4381  ;;  %v2590_v5 = vmul.f32 %v4380_v62, %v4364_v27  ;;  %4090 = vmatprep.subr.bf16.mxu0 %v4089_v15  ;;  %v1770_v27 = vld [vmem:[%s5548_s1 + $0x28] sm:$0xff] }
0x10f5   :  { %v2588_v54 = vmul.f32 %v4382_v60, %v4366_v28  ;;  %v4269_v40 = vpack.i.bf16 %v1770_v27, %v5102_v19 }
0x10f7   :  { %3865 = vmatprep.mubr.msk.f32.mxu1 %vm944_vm9, %v2588_v54  ;;  %4092 = vmatpush3.bf16.msra.mxu0 %v4089_v15 }
0x10f8   :  { %3866 = vmatmul.mubr.msk.f32.vlgmr.msra.gmra.mrb[30].mxu1 %vm944_vm9, %v2590_v5 }
0x10f9   :  { %3177 = vmatprep.mubr.f32.mxu1 %v4438_v24 }
0x1163   :  { %v3846_v12 = vpop.f32.mrb[10].mxu0 }
0x1164   :  { %v2665_v43 = vpop.f32.mrb[11].mxu0 }
0x11bd   :  { %v3853_v16 = vpop.f32.mrb[28].mxu1 }
0x11be   :  { %2927 = vrot.lane.b32.xlu1 %v3853_v16, %s4448_s4  ;;  %v2748_v26 = vpop.f32.mrb[29].mxu1 }
0x11c2   :  { %v3860_v51 = vpop.f32.mrb[12].mxu0 }
0x11c3   :  { %2935 = vrot.lane.b32.xlu1 %v3860_v51, %s4449_s5  ;;  %v2831_v11 = vpop.f32.mrb[13].mxu0 }
0x11c4   :  { %2933 = vrot.lane.b32.xlu0 %v2831_v11, %s4449_s5 }
0x11c7   :  { %2925 = vrot.lane.b32.xlu1 %v2748_v26, %s4448_s4 }
0x11cb   :  { %v3867_v28 = vpop.f32.mrb[30].mxu1 }
0x11cc   :  { %2943 = vrot.lane.b32.xlu1 %v3867_v28, %s4450_s6  ;;  %v2914_v29 = vpop.f32.mrb[31].mxu1 }
0x11cd   :  { %2941 = vrot.lane.b32.xlu0 %v2914_v29, %s4450_s6 }
0x11d0   :  { %4275 = vrot.lane.b32.xlu1 %v4274_v58, %s4451_s18 }
0x11d1   :  { %4270 = vrot.lane.b32.xlu0 %v4269_v40, %s4451_s18 }
0x11d5   :  { %4280 = vrot.lane.b32.xlu0 %v4279_v21, %s4451_s18 }
0x1230   :  { %v2928_v52 = vpop.permute.xlu1 %2927 }
0x1231   :  { %v2948_v19 = vsel %vm585_vm5, %v3846_v12, %v2928_v52 }
0x1235   :  { %v2936_v57 = vpop.permute.xlu1 %2935 }
0x1236   :  { %v2934_v17 = vpop.permute.xlu0 %2933  ;;  %v2950_v53 = vsel %vm944_vm9, %v2948_v19, %v2936_v57  ;;  %v1775_v19 = vld [vmem:[%s5548_s1 + $0x68] sm:$0xff] }
0x1239   :  { %v2926_v25 = vpop.permute.xlu1 %2925 }
0x123a   :  { %v2947_v55 = vsel %vm585_vm5, %v2665_v43, %v2926_v25 }
0x123b   :  { %v2949_v63 = vsel %vm944_vm9, %v2947_v55, %v2934_v17 }
0x123e   :  { %v2944_v31 = vpop.permute.xlu1 %2943 }
0x123f   :  { %v2942_v34 = vpop.permute.xlu0 %2941  ;;  %v2952_v20 = vsel %vm1393_vm13, %v2950_v53, %v2944_v31  ;;  %v1774_v31 = vld [vmem:[%s5548_s1 + $0x30] sm:$0xff]  ;;  %v1777_v53 = vld [vmem:[%s5548_s1 + $0xd8] sm:$0xff] }
0x1240   :  { %v2951_v45 = vsel %vm1393_vm13, %v2949_v63, %v2942_v34  ;;  %v1776_v63 = vld [vmem:[%s5548_s1 + $0xa0] sm:$0xff]  ;;  %v4101_v34 = vpack.c.bf16 %v1775_v19, %v1774_v31 }
0x1241   :  { %3876 = vmatprep.mubr.msk.f32.mxu0 %vm223_vm2, %v2951_v45  ;;  %v4105_v45 = vpack.c.bf16 %v1777_v53, %v1776_v63 }
0x1242   :  { %3877 = vmatmul.mubr.msk.f32.vlgmr.msra.gmra.mrb[14].mxu0 %vm223_vm2, %v2952_v20  ;;  %v4276_v8 = vpop.permute.xlu1 %4275  ;;  %v1778_v20 = vld [vmem:[%s5548_s1 + $0x110] sm:$0xff]  ;;  %4102 = vmatprep.subr.bf16.mxu0 %v4101_v34 }
0x1243   :  { %v4271_v41 = vpop.permute.xlu0 %4270  ;;  %v4278_v46 = vunpack.i.h.bf16 %v4276_v8  ;;  %v4277_v22 = vunpack.i.l.bf16 %v4276_v8  ;;  %v1779_v8 = vld [vmem:[%s5548_s1 + $0x148] sm:$0xff]  ;;  %4104 = vmatpush3.bf16.msra.mxu0 %v4101_v34 }
0x1244   :  { %v4273_v39 = vunpack.i.h.bf16 %v4271_v41  ;;  %v4272_v59 = vunpack.i.l.bf16 %v4271_v41  ;;  %4106 = vmatprep.subr.bf16.mxu0 %v4105_v45  ;;  %v4109_v41 = vpack.c.bf16 %v1779_v8, %v1778_v20 }
0x1245   :  { %v3096_v47 = vsel %vm3094_vm15, %v4277_v22, %v4278_v46  ;;  %v1781_v22 = vld [vmem:[%s5548_s1 + $0x1b8] sm:$0xff] }
0x1246   :  { %v4093_v42 = vpack.c.bf16 %v4278_v46, %v4273_v39  ;;  %v3095_v49 = vsel %vm3094_vm15, %v4272_v59, %v4273_v39  ;;  %v1780_v46 = vld [vmem:[%s5548_s1 + $0x180] sm:$0xff]  ;;  %v1782_v59 = vld [vmem:[%s5548_s1 + $0x1f0] sm:$0xff] }
0x1247   :  { %v4095_v62 = vpack.c.bf16 %v3096_v47, %v3095_v49  ;;  %v4281_v43 = vpop.permute.xlu0 %4280  ;;  %4108 = vmatpush3.bf16.msra.mxu0 %v4105_v45  ;;  %v4113_v39 = vpack.c.bf16 %v1781_v22, %v1780_v46  ;;  %v1783_v47 = vld [vmem:[%s5548_s1 + $0x228] sm:$0xff]  ;;  %v1784_v49 = vld [vmem:[%s5548_s1 + $0x260] sm:$0xff] }
0x1248   :  { %4094 = vmatprep.subr.bf16.mxu1 %v4093_v42  ;;  %v4283_v16 = vunpack.i.h.bf16 %v4281_v43  ;;  %v4282_v26 = vunpack.i.l.bf16 %v4281_v43  ;;  %4110 = vmatprep.subr.bf16.mxu0 %v4109_v41  ;;  %v4117_v42 = vpack.c.bf16 %v1783_v47, %v1782_v59 }
0x1249   :  { %4096 = vmatpush1.bf16.msra.mxu1 %v4095_v62  ;;  %v1785_v62 = vld [vmem:[%s5548_s1 + $0x298] sm:$0xff] }
0x124a   :  { %v3097_v28 = vsel %vm3094_vm15, %v4282_v26, %v4283_v16 }
0x124b   :  { %4112 = vmatpush3.bf16.msra.mxu0 %v4109_v41 }
0x124c   :  { %4114 = vmatprep.subr.bf16.mxu0 %v4113_v39 }
0x124f   :  { %4116 = vmatpush3.bf16.msra.mxu0 %v4113_v39 }
0x1250   :  { %4118 = vmatprep.subr.bf16.mxu0 %v4117_v42 }
0x1253   :  { %4120 = vmatpush3.bf16.msra.mxu0 %v4117_v42 }
0x1315   :  { %v3878_v60 = vpop.f32.mrb[14].mxu0 }
0x1316   :  { %v5435_v54 = vadd.f32 %v3878_v60, %v5127_v10  ;;  %v3037_v5 = vpop.f32.mrb[15].mxu0  ;;  %v1773_v10 = vld [vmem:[%s5548_s1 + $0xd0] sm:$0xff]  ;;  %v4121_v60 = vpack.c.bf16 %v1785_v62, %v1784_v49 }
0x1317   :  { %v5438_v50 = vadd.f32 %v3037_v5, %v5130_v18  ;;  %v4284_v12 = vpack.i.bf16 %v1773_v10, %v5141_v38  ;;  %v3515_v18 = vld [vmem:[%s5549_s2 + $0x3] ss:$0 sm:$0xff]  ;;  %s4454_s2 = smov [#allocation4]  }
0x1318   :  { %v3049_v23 = vmul.f32 %v5435_v54, %v5435_v54  ;;  %4122 = vmatprep.subr.bf16.mxu0 %v4121_v60 }
0x1319   :  { %v3048_v48 = vmul.f32 %v5438_v50, %v5438_v50  ;;  %4124 = vmatpush3.bf16.msra.mxu0 %v4121_v60 }
0x131a   :  { %v3053_v56 = vsel %vm223_vm2, %v3049_v23, 0.0 }
0x131b   :  { %3054 = vadd.xlane.f32.xlu1 %v3053_v56  ;;  %v3050_v14 = vsel %vm223_vm2, %v3048_v48, 0.0  ;;  %v4452_v48 = vmov 0.0|0.0  }
0x131c   :  { %3051 = vadd.xlane.f32.xlu0 %v3050_v14 }
0x132c   :  { %4285 = vrot.lane.b32.xlu1 %v4284_v12, %s4451_s18 }
0x1332   :  { %3069 = vrot.lane.b32.xlu0 %v3515_v18, %s4439_s17 }
0x13a8   :  { %v3055_v44 = vpop.xlane.xlu1 %3054 }
0x13a9   :  { %v3057_v7 = vmul.f32 0.03125, %v3055_v44  ;;  %v3052_v3 = vpop.xlane.xlu0 %3051 }
0x13aa   :  { %v3056_v15 = vmul.f32 0.03125, %v3052_v3 }
0x13ab   :  { %v3059_v51 = vadd.f32 1e-05, %v3057_v7 }
0x13ac   :  { %v3058_v11 = vadd.f32 1e-05, %v3056_v15  ;;  %v4286_v13 = vpop.permute.xlu1 %4285 }
0x13ad   :  { %4383 = vrsqrt.f32 %v3059_v51  ;;  %v4288_v38 = vunpack.i.h.bf16 %v4286_v13  ;;  %v4287_v27 = vunpack.i.l.bf16 %v4286_v13  ;;  %v3070_v52 = vpop.permute.xlu0 %3069 }
0x13ae   :  { %4385 = vrsqrt.f32 %v3058_v11 }
0x13af   :  { %v4097_v29 = vpack.c.bf16 %v4288_v38, %v4283_v16  ;;  %v3098_v58 = vsel %vm3094_vm15, %v4287_v27, %v4288_v38 }
0x13b0   :  { %v4099_v40 = vpack.c.bf16 %v3098_v58, %v3097_v28 }
0x13b1   :  { %4098 = vmatprep.subr.bf16.mxu1 %v4097_v29 }
0x13b2   :  { %4100 = vmatpush1.bf16.msra.mxu1 %v4099_v40 }
0x13b3   :  { %4125 = vmatprep.subr.bf16.mxu1 %v4452_v48 }
0x13b7   :  { %v4384_v61 = vpop.eup %4383 }
0x13b8   :  { %v4386_v21 = vpop.eup %4385  ;;  %v3063_v25 = vmul.f32 %v4384_v61, %v5435_v54 }
0x13b9   :  { %v3062_v57 = vmul.f32 %v4386_v21, %v5438_v50 }
0x13ba   :  { %v3073_v55 = vmul.f32 %v3070_v52, %v3063_v25 }
0x13bb   :  { %v3072_v17 = vmul.f32 %v3070_v52, %v3062_v57 }
0x13bd   :  { %3516 = vmatmul.mubr.msk.f32.vlgmr.msra.gmra.mrb[32].mxu1 %vm223_vm2, %v3072_v17 }
0x13be   :  { %3183 = vmatprep.mubr.f32.mxu1 %v4438_v24 }
0x13c1   :  { %3517 = vmatmul.mubr.msk.f32.gmra.mrb[34].mxu1 %vm223_vm2, %v3073_v55 }
0x13c2   :  { %3914 = vmatprep.mubr.msk.f32.mxu1 %vm4453_vm6, %v4438_v24 }
0x1490   :  { %v3179_v5 = vpop.f32.mrb[32].mxu1 }
0x1491   :  { %3206 = vrot.lane.b32.xlu1 %v3179_v5, %s4445_s28  ;;  %v3181_v23 = vpop.f32.mrb[33].mxu1  ;;  %v3190_v10 = vsub.f32 0.0, %v3179_v5 }
0x1492   :  { %3208 = vrot.lane.b32.xlu0 %v3181_v23, %s4445_s28 }
0x1493   :  { %v3192_v12 = vmul.f32 1.442695, %v3190_v10 }
0x1494   :  { %v3185_v56 = vpop.f32.mrb[34].mxu1 }
0x1495   :  { %3210 = vrot.lane.b32.xlu1 %v3185_v56, %s4445_s28  ;;  %v3187_v14 = vpop.f32.mrb[35].mxu1  ;;  %v3191_v18 = vsub.f32 0.0, %v3185_v56  ;;  %4387 = vpow2.f32 %v3192_v12 }
0x1496   :  { %3212 = vrot.lane.b32.xlu0 %v3187_v14, %s4445_s28 }
0x1497   :  { %v3194_v43 = vmul.f32 1.442695, %v3191_v18 }
0x1499   :  { %4389 = vpow2.f32 %v3194_v43 }
0x149a   :  { %4290 = vrot.lane.b32.xlu0 %v4289_v4, %s4439_s17 }
0x149e   :  { %4295 = vrot.lane.b32.xlu0 %v4294_v9, %s4439_s17 }
0x149f   :  { %v4388_v44 = vpop.eup %4387 }
0x14a0   :  { %v3196_v7 = vadd.f32 1.0, %v4388_v44 }
0x14a2   :  { %4391 = vrcp.f32 %v3196_v7  ;;  %3325 = vrot.lane.b32.xlu0 %v3520_v30, %s4439_s17  ;;  %s3429_s17 = sshll.u32 %s4454_s2, 4  ;;  %s3430_s17 = int_to_ptr.vmem [resolvable:$true] %s3429_s17 }
0x14a3   :  { %v4390_v3 = vpop.eup %4389  ;;  %s4411_s7 = scalar_lea.vmem %s3430_s17, 32  ;;  %p4416_p6 = scmp.lt.s32.totalorder %s3430_s17, %s3430_s17 }
0x14a4   :  { %v3197_v15 = vadd.f32 1.0, %v4390_v3  ;;  %p4412_p5 = scmp.ne.s32.totalorder %s3430_s17, %s4411_s7  ;;  %p4417_p7 = scmp.lt.s32.totalorder %s4411_s7, %s4411_s7 }
0x14a6   :  { %4393 = vrcp.f32 %v3197_v15  ;;  %p4418_p8 = por %p4417_p7, %p4416_p6 }
0x14a8   :  { %p4419_p9 = pnand %p4418_p8, %p4412_p5 }
0x14ac   :  { %v4392_v16 = vpop.eup %4391 }
0x14ad   :  { %v3199_v1 = vmul.f32 %v4392_v16, %v3179_v5 }
0x14b0   :  { %v4394_v26 = vpop.eup %4393 }
0x14b1   :  { %v3201_v51 = vmul.f32 %v4394_v26, %v3185_v56 }
0x1503   :  { %v3207_v0 = vpop.permute.xlu1 %3206 }
0x1504   :  { %v3209_v4 = vpop.permute.xlu0 %3208 }
0x1505   :  { %v3214_v2 = vsel %vm223_vm2, %v3207_v0, %v3209_v4 }
0x1506   :  { %v3218_v6 = vmul.f32 %v3214_v2, %v3199_v1 }
0x1507   :  { %v3211_v9 = vpop.permute.xlu1 %3210 }
0x1508   :  { %3903 = vmatprep.mubr.msk.f32.mxu0 %vm1678_vm14, %v3218_v6  ;;  %v3213_v11 = vpop.permute.xlu0 %3212 }
0x1509   :  { %v3215_v13 = vsel %vm223_vm2, %v3211_v9, %v3213_v11 }
0x150a   :  { %v3219_v38 = vmul.f32 %v3215_v13, %v3201_v51 }
0x150c   :  { %3904 = vmatmul.mubr.msk.f32.vlgmr.msra.gmra.mrb[16].mxu0 %vm1678_vm14, %v3219_v38  ;;  %v4291_v27 = vpop.permute.xlu0 %4290 }
0x150d   :  { %v4293_v28 = vunpack.i.h.bf16 %v4291_v27  ;;  %v4292_v29 = vunpack.i.l.bf16 %v4291_v27 }
0x150f   :  { %v3342_v58 = vsel %vm1678_vm14, %v4293_v28, %v4153_v32  ;;  %v3341_v40 = vsel %vm1678_vm14, %v4292_v29, %v4152_v33 }
0x1510   :  { %v4126_v61 = vpack.c.bf16 %v3342_v58, %v3341_v40  ;;  %v4296_v21 = vpop.permute.xlu0 %4295 }
0x1511   :  { %v4298_v52 = vunpack.i.h.bf16 %v4296_v21  ;;  %v4297_v57 = vunpack.i.l.bf16 %v4296_v21 }
0x1512   :  { %4127 = vmatpush3.bf16.msra.mxu1 %v4126_v61 }
0x1513   :  { %v3344_v25 = vsel %vm1678_vm14, %v4298_v52, %v4158_v36  ;;  %v3343_v17 = vsel %vm1678_vm14, %v4297_v57, %v4157_v37  ;;  %4128 = vmatprep.subr.bf16.mxu1 %v4452_v48 }
0x1514   :  { %v4129_v55 = vpack.c.bf16 %v3344_v25, %v3343_v17 }
0x1516   :  { %4130 = vmatpush3.bf16.msra.mxu1 %v4129_v55 }
0x15df   :  { %v3905_v32 = vpop.f32.mrb[16].mxu0 }
0x15e0   :  { %v3302_v33 = vadd.f32 %v3905_v32, %v5435_v54  ;;  %v3292_v31 = vpop.f32.mrb[17].mxu0  ;;  %v3326_v54 = vpop.permute.xlu0 %3325 }
0x15e1   :  { %v3301_v19 = vadd.f32 %v3292_v31, %v5438_v50 }
0x15e2   :  { %v3308_v36 = vrot.slane %v3302_v33, 6 }
0x15e3   :  { %v3305_v63 = vrot.slane %v3301_v19, 7 }
0x15e5   :  { %v3310_v35 = vsel %vm107_vm0, %v3305_v63, %v3308_v36 }
0x15e6   :  { %v3311_v37 = vmul.f32 %v3310_v35, %v3310_v35 }
0x15e8   :  { %v3313_v34 = vsel %vm3312_vm3, %v3311_v37, 0.0 }
0x15e9   :  { %3314 = vadd.xlane.f32.xlu1 %v3313_v34 }
0x1676   :  { %v3315_v53 = vpop.xlane.xlu1 %3314 }
0x1677   :  { %v3316_v45 = vmul.f32 0.03125, %v3315_v53 }
0x1679   :  { %v3317_v20 = vadd.f32 1e-05, %v3316_v45 }
0x167b   :  { %4395 = vrsqrt.f32 %v3317_v20 }
0x1685   :  { %v4396_v8 = vpop.eup %4395 }
0x1686   :  { %v3319_v41 = vmul.f32 %v4396_v8, %v3310_v35 }
0x1688   :  { %v3328_v46 = vmul.f32 %v3326_v54, %v3319_v41 }
0x168a   :  { %3915 = vmatmul.mubr.msk.f32.vlgmr.msra.gmra.mrb[36].mxu1 %vm223_vm2, %v3328_v46 }
0x175d   :  { %v3418_v50 = vpop.f32.mrb[36].mxu1 }
0x175e   :  { %3422 = vst [vmem:[#allocation4] sm:$0x3] %v3418_v50  ;;  %v3916_v22 = vpop.f32.mrb[37].mxu1 }
0x175f   :  { %4422 = shalt.err (!%p4419_p9)
}
0x1760   :  { %s4423_s9 = scalar_lea.hbm %s5550_s3, 32 }
0x1761   :  { %p4424_p10 = scmp.ne.s32.totalorder %s5550_s3, %s4423_s9  ;;  %p4427_p11 = scmp.lt.u32.totalorder %s4423_s9, %s5550_s3 }
0x1763   :  { %p4429_p12 = pnand %p4427_p11, %p4424_p10 }
0x1765   :  { %4432 = shalt.err (!%p4429_p12)
}
0x1766   :  { %3432 = dma.vmem_to_hbm [thread:$0]  %s3430_s17, 32, %s5550_s3, [#allocation5]  }
0x1767   :  { %4435 = dma.done.wait [#allocation5], 32  }
0x1768   :  { %4436 = vsyncadd [#allocation5], 4294967264 }
0x1769   :  { %3436 = vsyncpa [#allocation5], 1 }

</bundles_post_ra>
